<compile_context>
chip_gen: v7x
topology: tpu7x:2x2x1
jax: 0.10.0
libtpu: 0.0.40
codegen_flags: <defaults>
</compile_context>

<pallas_src>
import functools

import jax
import jax.numpy as jnp
from jax.experimental import pallas as pl
from jax.experimental.pallas import tpu as pltpu


_LANE = 128
_SUBLANE = 8


def _round_up(n, m):
    return (n + m - 1) // m * m


# ----------------------------- Pallas kernel --------------------------------
def _fused_mlp_kernel(*refs, num_layers):
    """Whole MLP in a single grid step.

    refs = (x, w0, b0, w1, b1, ..., w_{L-1}, b_{L-1}, out).
    Weights are bf16 (memory-bound workload -> halve the weight stream);
    biases, bias-add, ReLU and matmul accumulation are f32.
    ReLU after every layer except the last (matches nn.Sequential layout).
    """
    x_ref = refs[0]
    o_ref = refs[1 + 2 * num_layers]

    h = x_ref[...]  # (M, K0) f32, resident in VMEM for the whole pass
    for i in range(num_layers):
        w_ref = refs[1 + 2 * i]
        b_ref = refs[2 + 2 * i]
        y = jnp.dot(
            h.astype(w_ref.dtype), w_ref[...],
            preferred_element_type=jnp.float32,
        ) + b_ref[...]                       # b_ref is (1, N): broadcasts over rows
        if i < num_layers - 1:
            y = jnp.maximum(y, 0.0)
        h = y
    o_ref[...] = h.astype(o_ref.dtype)


# ----------------------------- Wrapper ---------------------------------------
def prepare_params(params, param_dtype=jnp.bfloat16):
    """Zero-pad every feature dim up to a multiple of 128 (exact math is
    preserved: padded weight rows/cols and biases are zero) and cast weights
    to `param_dtype`.  Returns [(w:(Kp,Np) param_dtype, b:(1,Np) f32), ...]."""
    prepared = []
    for w, b in params:
        k, n = w.shape
        kp, np_ = _round_up(k, _LANE), _round_up(n, _LANE)
        wp = jnp.zeros((kp, np_), jnp.float32).at[:k, :n].set(w).astype(param_dtype)
        bp = jnp.zeros((1, np_), jnp.float32).at[0, :n].set(b)
        prepared.append((wp, bp))
    return prepared


def mlp_forward_pallas(x, prepared, out_dim):
    """Forward pass of the fused MLP. x:(M, in_dim) f32 -> (M, out_dim) f32."""
    m, k = x.shape
    mp = _round_up(m, _SUBLANE)
    k0p = prepared[0][0].shape[0]
    xp = jnp.zeros((mp, k0p), jnp.float32).at[:m, :k].set(x)

    num_layers = len(prepared)
    n_last = prepared[-1][0].shape[1]

    flat_params = []
    in_specs = [pl.BlockSpec(xp.shape, lambda i: (0, 0))]
    for w, b in prepared:
        flat_params += [w, b]
        in_specs += [
            pl.BlockSpec(w.shape, lambda i: (0, 0)),
            pl.BlockSpec(b.shape, lambda i: (0, 0)),
        ]

    kernel = functools.partial(_fused_mlp_kernel, num_layers=num_layers)

    out = pl.pallas_call(
        kernel,
        out_shape=jax.ShapeDtypeStruct((mp, n_last), jnp.float32),
        grid_spec=pltpu.PrefetchScalarGridSpec(
            num_scalar_prefetch=0,
            grid=(1,),  # whole model fits VMEM -> one step, no per-step overhead
            in_specs=in_specs,
            out_specs=pl.BlockSpec((mp, n_last), lambda i: (0, 0)),
        ),
        compiler_params=pltpu.CompilerParams(
            dimension_semantics=("arbitrary",),
            # ~5.5 MiB actually used (double-buffered bf16 weights + acts);
            # 32 MiB is safe headroom on v5e (128 MiB phys) and v7x (64 MiB).
            vmem_limit_bytes=32 * 1024 * 1024,
        ),
    )(xp, *flat_params)

    return out[:m, :out_dim]


# ----------------------------- Init (PyTorch-like) ---------------------------
def init_linear_params(key, in_dim, out_dim):
    """Mimics nn.Linear default init U(-1/sqrt(in), 1/sqrt(in)); stores W as
    (in_dim, out_dim) so the kernel computes x @ W + b."""
    kw, kb = jax.random.split(key)
    bound = 1.0 / jnp.sqrt(jnp.float32(in_dim))
    w = jax.random.uniform(kw, (in_dim, out_dim), jnp.float32, -bound, bound)
    b = jax.random.uniform(kb, (out_dim,), jnp.float32, -bound, bound)
    return w, b


def init_mlp(key, input_dim, hidden_dims, output_dim):
    dims = [input_dim] + list(hidden_dims) + [output_dim]
    params = []
    for i in range(len(dims) - 1):
        key, sub = jax.random.split(key)
        params.append(init_linear_params(sub, dims[i], dims[i + 1]))
    return params


# --------------------------------- Main ---------------------------------------
if __name__ == "__main__":
    # Exact dims hard-coded in LinearModelforEnsemble: 1024 -> 512 x4 (ReLU) -> 1.
    batch = 8
    input_dim = 1024
    hidden_dims = [512, 512, 512, 512]
    output_dim = 1

    key = jax.random.PRNGKey(0)
    kx, kp = jax.random.split(key)
    x = jax.random.normal(kx, (batch, input_dim), jnp.float32)
    params = init_mlp(kp, input_dim, hidden_dims, output_dim)

    prepared = prepare_params(params, param_dtype=jnp.bfloat16)
    out = mlp_forward_pallas(x, prepared, output_dim)
    out = jax.block_until_ready(out)
    assert out.shape == (batch, output_dim)

    # Plain-JAX reference using the same bf16 weight/activation casts and f32
    # accumulation, so the comparison is apples-to-apples.
    h = x
    n = len(params)
    for i, (w, b) in enumerate(params):
        h = jnp.dot(h.astype(jnp.bfloat16), w.astype(jnp.bfloat16),
                    preferred_element_type=jnp.float32) + b
        if i < n - 1:
            h = jnp.maximum(h, 0.0)
    ref = h

    assert jnp.allclose(out, ref, atol=1e-2, rtol=1e-2), float(
        jnp.max(jnp.abs(out - ref)))
    print("KERNEL_OK")
</pallas_src>

<mosaic_0001>
module attributes {stable_mosaic.version = 11 : i64} {
  func.func @_fused_mlp_kernel(%arg0: i32, %arg1: memref<8x1024xf32, #tpu.memory_space<vmem>>, %arg2: memref<1024x512xbf16, #tpu.memory_space<vmem>>, %arg3: memref<1x512xf32, #tpu.memory_space<vmem>>, %arg4: memref<512x512xbf16, #tpu.memory_space<vmem>>, %arg5: memref<1x512xf32, #tpu.memory_space<vmem>>, %arg6: memref<512x512xbf16, #tpu.memory_space<vmem>>, %arg7: memref<1x512xf32, #tpu.memory_space<vmem>>, %arg8: memref<512x512xbf16, #tpu.memory_space<vmem>>, %arg9: memref<1x512xf32, #tpu.memory_space<vmem>>, %arg10: memref<512x128xbf16, #tpu.memory_space<vmem>>, %arg11: memref<1x128xf32, #tpu.memory_space<vmem>>, %arg12: memref<8x128xf32, #tpu.memory_space<vmem>>) attributes {dimension_semantics = [#tpu.dimension_semantics<arbitrary>], iteration_bounds = array<i64: 1>, scalar_prefetch = 0 : i64, scratch_operands = 0 : i64, tpu.core_type = #tpu.core_type<tc>, window_params = [{pipeline_mode = #tpu.pipeline_mode<synchronous>, transform_indices = @transform_0, window_bounds = array<i64: 8, 1024>}, {pipeline_mode = #tpu.pipeline_mode<synchronous>, transform_indices = @transform_1, window_bounds = array<i64: 1024, 512>}, {pipeline_mode = #tpu.pipeline_mode<synchronous>, transform_indices = @transform_2, window_bounds = array<i64: 1, 512>}, {pipeline_mode = #tpu.pipeline_mode<synchronous>, transform_indices = @transform_3, window_bounds = array<i64: 512, 512>}, {pipeline_mode = #tpu.pipeline_mode<synchronous>, transform_indices = @transform_4, window_bounds = array<i64: 1, 512>}, {pipeline_mode = #tpu.pipeline_mode<synchronous>, transform_indices = @transform_5, window_bounds = array<i64: 512, 512>}, {pipeline_mode = #tpu.pipeline_mode<synchronous>, transform_indices = @transform_6, window_bounds = array<i64: 1, 512>}, {pipeline_mode = #tpu.pipeline_mode<synchronous>, transform_indices = @transform_7, window_bounds = array<i64: 512, 512>}, {pipeline_mode = #tpu.pipeline_mode<synchronous>, transform_indices = @transform_8, window_bounds = array<i64: 1, 512>}, {pipeline_mode = #tpu.pipeline_mode<synchronous>, transform_indices = @transform_9, window_bounds = array<i64: 512, 128>}, {pipeline_mode = #tpu.pipeline_mode<synchronous>, transform_indices = @transform_10, window_bounds = array<i64: 1, 128>}, {pipeline_mode = #tpu.pipeline_mode<synchronous>, transform_indices = @transform_11, window_bounds = array<i64: 8, 128>}]} {
    %c0 = arith.constant 0 : index
    %c0_0 = arith.constant 0 : index
    %0 = vector.load %arg1[%c0, %c0_0] : memref<8x1024xf32, #tpu.memory_space<vmem>>, vector<8x1024xf32>
    %1 = arith.truncf %0 : vector<8x1024xf32> to vector<8x1024xbf16>
    %c0_1 = arith.constant 0 : index
    %c0_2 = arith.constant 0 : index
    %2 = vector.load %arg2[%c0_1, %c0_2] : memref<1024x512xbf16, #tpu.memory_space<vmem>>, vector<1024x512xbf16>
    %cst = arith.constant dense<0.000000e+00> : vector<8x512xf32>
    %3 = tpu.matmul %1, %2, %cst {dimension_numbers = #tpu.dot_dimension_numbers<[1], [0], [0], [1], [0, 0, 1, 1], [], []>} : vector<8x1024xbf16>, vector<1024x512xbf16>, vector<8x512xf32> -> vector<8x512xf32>
    %c0_3 = arith.constant 0 : index
    %c0_4 = arith.constant 0 : index
    %4 = vector.load %arg3[%c0_3, %c0_4] : memref<1x512xf32, #tpu.memory_space<vmem>>, vector<1x512xf32>
    %5 = vector.broadcast %4 : vector<1x512xf32> to vector<8x512xf32>
    %6 = arith.addf %3, %5 : vector<8x512xf32>
    %cst_5 = arith.constant 0.000000e+00 : f32
    %7 = vector.broadcast %cst_5 : f32 to vector<8x512xf32>
    %8 = arith.maximumf %6, %7 : vector<8x512xf32>
    %9 = arith.truncf %8 : vector<8x512xf32> to vector<8x512xbf16>
    %c0_6 = arith.constant 0 : index
    %c0_7 = arith.constant 0 : index
    %10 = vector.load %arg4[%c0_6, %c0_7] : memref<512x512xbf16, #tpu.memory_space<vmem>>, vector<512x512xbf16>
    %cst_8 = arith.constant dense<0.000000e+00> : vector<8x512xf32>
    %11 = tpu.matmul %9, %10, %cst_8 {dimension_numbers = #tpu.dot_dimension_numbers<[1], [0], [0], [1], [0, 0, 1, 1], [], []>} : vector<8x512xbf16>, vector<512x512xbf16>, vector<8x512xf32> -> vector<8x512xf32>
    %c0_9 = arith.constant 0 : index
    %c0_10 = arith.constant 0 : index
    %12 = vector.load %arg5[%c0_9, %c0_10] : memref<1x512xf32, #tpu.memory_space<vmem>>, vector<1x512xf32>
    %13 = vector.broadcast %12 : vector<1x512xf32> to vector<8x512xf32>
    %14 = arith.addf %11, %13 : vector<8x512xf32>
    %cst_11 = arith.constant 0.000000e+00 : f32
    %15 = vector.broadcast %cst_11 : f32 to vector<8x512xf32>
    %16 = arith.maximumf %14, %15 : vector<8x512xf32>
    %17 = arith.truncf %16 : vector<8x512xf32> to vector<8x512xbf16>
    %c0_12 = arith.constant 0 : index
    %c0_13 = arith.constant 0 : index
    %18 = vector.load %arg6[%c0_12, %c0_13] : memref<512x512xbf16, #tpu.memory_space<vmem>>, vector<512x512xbf16>
    %cst_14 = arith.constant dense<0.000000e+00> : vector<8x512xf32>
    %19 = tpu.matmul %17, %18, %cst_14 {dimension_numbers = #tpu.dot_dimension_numbers<[1], [0], [0], [1], [0, 0, 1, 1], [], []>} : vector<8x512xbf16>, vector<512x512xbf16>, vector<8x512xf32> -> vector<8x512xf32>
    %c0_15 = arith.constant 0 : index
    %c0_16 = arith.constant 0 : index
    %20 = vector.load %arg7[%c0_15, %c0_16] : memref<1x512xf32, #tpu.memory_space<vmem>>, vector<1x512xf32>
    %21 = vector.broadcast %20 : vector<1x512xf32> to vector<8x512xf32>
    %22 = arith.addf %19, %21 : vector<8x512xf32>
    %cst_17 = arith.constant 0.000000e+00 : f32
    %23 = vector.broadcast %cst_17 : f32 to vector<8x512xf32>
    %24 = arith.maximumf %22, %23 : vector<8x512xf32>
    %25 = arith.truncf %24 : vector<8x512xf32> to vector<8x512xbf16>
    %c0_18 = arith.constant 0 : index
    %c0_19 = arith.constant 0 : index
    %26 = vector.load %arg8[%c0_18, %c0_19] : memref<512x512xbf16, #tpu.memory_space<vmem>>, vector<512x512xbf16>
    %cst_20 = arith.constant dense<0.000000e+00> : vector<8x512xf32>
    %27 = tpu.matmul %25, %26, %cst_20 {dimension_numbers = #tpu.dot_dimension_numbers<[1], [0], [0], [1], [0, 0, 1, 1], [], []>} : vector<8x512xbf16>, vector<512x512xbf16>, vector<8x512xf32> -> vector<8x512xf32>
    %c0_21 = arith.constant 0 : index
    %c0_22 = arith.constant 0 : index
    %28 = vector.load %arg9[%c0_21, %c0_22] : memref<1x512xf32, #tpu.memory_space<vmem>>, vector<1x512xf32>
    %29 = vector.broadcast %28 : vector<1x512xf32> to vector<8x512xf32>
    %30 = arith.addf %27, %29 : vector<8x512xf32>
    %cst_23 = arith.constant 0.000000e+00 : f32
    %31 = vector.broadcast %cst_23 : f32 to vector<8x512xf32>
    %32 = arith.maximumf %30, %31 : vector<8x512xf32>
    %33 = arith.truncf %32 : vector<8x512xf32> to vector<8x512xbf16>
    %c0_24 = arith.constant 0 : index
    %c0_25 = arith.constant 0 : index
    %34 = vector.load %arg10[%c0_24, %c0_25] : memref<512x128xbf16, #tpu.memory_space<vmem>>, vector<512x128xbf16>
    %cst_26 = arith.constant dense<0.000000e+00> : vector<8x128xf32>
    %35 = tpu.matmul %33, %34, %cst_26 {dimension_numbers = #tpu.dot_dimension_numbers<[1], [0], [0], [1], [0, 0, 1, 1], [], []>} : vector<8x512xbf16>, vector<512x128xbf16>, vector<8x128xf32> -> vector<8x128xf32>
    %c0_27 = arith.constant 0 : index
    %c0_28 = arith.constant 0 : index
    %36 = vector.load %arg11[%c0_27, %c0_28] : memref<1x128xf32, #tpu.memory_space<vmem>>, vector<1x128xf32>
    %37 = vector.broadcast %36 : vector<1x128xf32> to vector<8x128xf32>
    %38 = arith.addf %35, %37 : vector<8x128xf32>
    %c0_29 = arith.constant 0 : index
    %c0_30 = arith.constant 0 : index
    %39 = vector.load %arg12[%c0_29, %c0_30] : memref<8x128xf32, #tpu.memory_space<vmem>>, vector<8x128xf32>
    tpu.vector_store %arg12[%c0_29, %c0_30], %38 {strides = array<i32>} : memref<8x128xf32, #tpu.memory_space<vmem>>, vector<8x128xf32>,
    return
  }
  func.func @transform_0(%arg0: i32) -> (i32, i32) {
    %c0_i32 = arith.constant 0 : i32
    %c0_i32_0 = arith.constant 0 : i32
    %c0_i32_1 = arith.constant 0 : i32
    return %c0_i32, %c0_i32_0 : i32, i32
  }
  func.func @transform_1(%arg0: i32) -> (i32, i32) {
    %c0_i32 = arith.constant 0 : i32
    %c0_i32_0 = arith.constant 0 : i32
    %c0_i32_1 = arith.constant 0 : i32
    return %c0_i32, %c0_i32_0 : i32, i32
  }
  func.func @transform_2(%arg0: i32) -> (i32, i32) {
    %c0_i32 = arith.constant 0 : i32
    %c0_i32_0 = arith.constant 0 : i32
    %c0_i32_1 = arith.constant 0 : i32
    return %c0_i32, %c0_i32_0 : i32, i32
  }
  func.func @transform_3(%arg0: i32) -> (i32, i32) {
    %c0_i32 = arith.constant 0 : i32
    %c0_i32_0 = arith.constant 0 : i32
    %c0_i32_1 = arith.constant 0 : i32
    return %c0_i32, %c0_i32_0 : i32, i32
  }
  func.func @transform_4(%arg0: i32) -> (i32, i32) {
    %c0_i32 = arith.constant 0 : i32
    %c0_i32_0 = arith.constant 0 : i32
    %c0_i32_1 = arith.constant 0 : i32
    return %c0_i32, %c0_i32_0 : i32, i32
  }
  func.func @transform_5(%arg0: i32) -> (i32, i32) {
    %c0_i32 = arith.constant 0 : i32
    %c0_i32_0 = arith.constant 0 : i32
    %c0_i32_1 = arith.constant 0 : i32
    return %c0_i32, %c0_i32_0 : i32, i32
  }
  func.func @transform_6(%arg0: i32) -> (i32, i32) {
    %c0_i32 = arith.constant 0 : i32
    %c0_i32_0 = arith.constant 0 : i32
    %c0_i32_1 = arith.constant 0 : i32
    return %c0_i32, %c0_i32_0 : i32, i32
  }
  func.func @transform_7(%arg0: i32) -> (i32, i32) {
    %c0_i32 = arith.constant 0 : i32
    %c0_i32_0 = arith.constant 0 : i32
    %c0_i32_1 = arith.constant 0 : i32
    return %c0_i32, %c0_i32_0 : i32, i32
  }
  func.func @transform_8(%arg0: i32) -> (i32, i32) {
    %c0_i32 = arith.constant 0 : i32
    %c0_i32_0 = arith.constant 0 : i32
    %c0_i32_1 = arith.constant 0 : i32
    return %c0_i32, %c0_i32_0 : i32, i32
  }
  func.func @transform_9(%arg0: i32) -> (i32, i32) {
    %c0_i32 = arith.constant 0 : i32
    %c0_i32_0 = arith.constant 0 : i32
    %c0_i32_1 = arith.constant 0 : i32
    return %c0_i32, %c0_i32_0 : i32, i32
  }
  func.func @transform_10(%arg0: i32) -> (i32, i32) {
    %c0_i32 = arith.constant 0 : i32
    %c0_i32_0 = arith.constant 0 : i32
    %c0_i32_1 = arith.constant 0 : i32
    return %c0_i32, %c0_i32_0 : i32, i32
  }
  func.func @transform_11(%arg0: i32) -> (i32, i32) {
    %c0_i32 = arith.constant 0 : i32
    %c0_i32_0 = arith.constant 0 : i32
    %c0_i32_1 = arith.constant 0 : i32
    return %c0_i32, %c0_i32_0 : i32, i32
  }
}

</mosaic_0001>

<bundles_post_ra>
// kernel: tpu_custom_call.1
= control target key start
LH: loop header
LB: loop body
LE: loop exit
PB: predicated region body
PF: predicated region fallthrough
CT: control target
= control target key end

     0   :  { %16 = vsyncpa [#allocation3], 0  ;;  %s7465_s0 = inlined_call_operand.hbm [shape: f32[8,1024], index: 0, kind: input, shape index: {}]   ;;  %s7466_s1 = inlined_call_operand.hbm [shape: bf16[1024,512], index: 1, kind: input, shape index: {}]   ;;  %s7467_s2 = inlined_call_operand.vmem [shape: f32[1,512], index: 2, kind: input, shape index: {}]   ;;  %s7468_s3 = inlined_call_operand.hbm [shape: bf16[512,512], index: 3, kind: input, shape index: {}]   ;;  %s7469_s4 = inlined_call_operand.vmem [shape: f32[1,512], index: 4, kind: input, shape index: {}]   ;;  %s7470_s5 = inlined_call_operand.hbm [shape: bf16[512,512], index: 5, kind: input, shape index: {}]   ;;  %s7471_s6 = inlined_call_operand.vmem [shape: f32[1,512], index: 6, kind: input, shape index: {}]   ;;  %s7472_s7 = inlined_call_operand.hbm [shape: bf16[512,512], index: 7, kind: input, shape index: {}]   ;;  %s7473_s8 = inlined_call_operand.vmem [shape: f32[1,512], index: 8, kind: input, shape index: {}]   ;;  %s7474_s9 = inlined_call_operand.hbm [shape: bf16[512,128], index: 9, kind: input, shape index: {}]   ;;  %s7475_s10 = inlined_call_operand.vmem [shape: f32[1,128], index: 10, kind: input, shape index: {}]   ;;  %s7476_s11 = inlined_call_operand.hbm [shape: f32[8,128], index: 11, kind: output, shape index: {}]  }
   0x1   :  { %17 = vsyncpa [#allocation6], 0 }
   0x2   :  { %18 = vsyncpa [#allocation9], 0 }
   0x3   :  { %19 = vsyncpa [#allocation12], 0 }
   0x4   :  { %20 = vsyncpa [#allocation4], 0  ;;  %s7226_s17 = smov [#allocation5]   ;;  %s7062_s21 = scalar_lea.hbm %s7466_s1, 32768 }
   0x5   :  { %s36_s18 = sshll.u32 %s7226_s17, 4  ;;  %p7063_p0 = scmp.ne.s32.totalorder %s7466_s1, %s7062_s21  ;;  %s37_s18 = int_to_ptr.vmem [resolvable:$true] %s36_s18 }
   0x6   :  { %p7066_p1 = scmp.lt.u32.totalorder %s7062_s21, %s7466_s1 }
   0x8   :  { %p7068_p2 = pnand %p7066_p1, %p7063_p0 }
   0xa   :  { %7071 = shalt.err (!%p7068_p2)
}
   0xb   :  { %s7072_s26 = scalar_lea.vmem %s37_s18, 32768  ;;  %p7077_p4 = scmp.lt.s32.totalorder %s37_s18, %s37_s18 }
   0xc   :  { %p7073_p3 = scmp.ne.s32.totalorder %s37_s18, %s7072_s26  ;;  %p7078_p5 = scmp.lt.s32.totalorder %s7072_s26, %s7072_s26 }
   0xe   :  { %p7079_p6 = por %p7078_p5, %p7077_p4 }
  0x10   :  { %p7080_p7 = pnand %p7079_p6, %p7073_p3 }
  0x12   :  { %7083 = shalt.err (!%p7080_p7)
}
  0x13   :  { %s7227_s27 = smov 256   ;;  %s7228_s28 = smov 16  }
  0x14   :  { %42 = dma.hbm_to_vmem [thread:$0]  %s7466_s1, 32768, %s37_s18, [#allocation6], %s7227_s27, %s7227_s27, %s7228_s28  }
  0x15   :  { %s7229_s12 = smov [#allocation8]   ;;  %s7230_s14 = smov [#allocation2]  }
  0x16   :  { %s64_s13 = sshll.u32 %s7229_s12, 4  ;;  %s27_s15 = sshll.u32 %s7230_s14, 4  ;;  %s65_s13 = int_to_ptr.vmem [resolvable:$true] %s64_s13  ;;  %s28_s15 = int_to_ptr.vmem [resolvable:$true] %s27_s15 }
  0x17   :  { %s7084_s19 = scalar_lea.hbm %s7470_s5, 16384 }
  0x18   :  { %p7085_p8 = scmp.ne.s32.totalorder %s7470_s5, %s7084_s19  ;;  %p7088_p9 = scmp.lt.u32.totalorder %s7084_s19, %s7470_s5 }
  0x1a   :  { %p7090_p10 = pnand %p7088_p9, %p7085_p8 }
  0x1c   :  { %7093 = shalt.err (!%p7090_p10)
}
  0x1d   :  { %s7094_s1 = scalar_lea.vmem %s65_s13, 16384  ;;  %p7099_p12 = scmp.lt.s32.totalorder %s65_s13, %s65_s13 }
  0x1e   :  { %p7095_p11 = scmp.ne.s32.totalorder %s65_s13, %s7094_s1  ;;  %p7100_p13 = scmp.lt.s32.totalorder %s7094_s1, %s7094_s1 }
  0x20   :  { %p7101_p0 = por %p7100_p13, %p7099_p12 }
  0x22   :  { %p7102_p1 = pnand %p7101_p0, %p7095_p11 }
  0x24   :  { %7105 = shalt.err (!%p7102_p1)
}
  0x25   :  { %70 = dma.hbm_to_vmem [thread:$0]  %s7470_s5, 16384, %s65_s13, [#allocation9], %s7227_s27, %s7227_s27, %s7228_s28  }
  0x26   :  { %s7106_s29 = scalar_lea.hbm %s7465_s0, 1024 }
  0x27   :  { %p7107_p2 = scmp.ne.s32.totalorder %s7465_s0, %s7106_s29  ;;  %p7110_p3 = scmp.lt.u32.totalorder %s7106_s29, %s7465_s0 }
  0x29   :  { %p7112_p4 = pnand %p7110_p3, %p7107_p2 }
  0x2b   :  { %7115 = shalt.err (!%p7112_p4)
}
  0x2c   :  { %s7116_s17 = scalar_lea.vmem %s28_s15, 1024  ;;  %p7121_p6 = scmp.lt.s32.totalorder %s28_s15, %s28_s15 }
  0x2d   :  { %p7117_p5 = scmp.ne.s32.totalorder %s28_s15, %s7116_s17  ;;  %p7122_p7 = scmp.lt.s32.totalorder %s7116_s17, %s7116_s17 }
  0x2f   :  { %p7123_p8 = por %p7122_p7, %p7121_p6 }
  0x31   :  { %p7124_p9 = pnand %p7123_p8, %p7117_p5 }
  0x33   :  { %7127 = shalt.err (!%p7124_p9)
}
  0x34   :  { %30 = dma.hbm_to_vmem [thread:$0]  %s7465_s0, 1024, %s28_s15, [#allocation3]  }
  0x35   :  { %s7231_s19 = smov [#allocation7]   ;;  %s7232_s21 = smov [#allocation10]  }
  0x36   :  { %s50_s20 = sshll.u32 %s7231_s19, 4  ;;  %s78_s22 = sshll.u32 %s7232_s21, 4  ;;  %s51_s20 = int_to_ptr.vmem [resolvable:$true] %s50_s20  ;;  %s79_s22 = int_to_ptr.vmem [resolvable:$true] %s78_s22 }
  0x37   :  { %s7128_s18 = scalar_lea.hbm %s7468_s3, 16384 }
  0x38   :  { %p7129_p10 = scmp.ne.s32.totalorder %s7468_s3, %s7128_s18  ;;  %p7132_p11 = scmp.lt.u32.totalorder %s7128_s18, %s7468_s3 }
  0x3a   :  { %p7134_p12 = pnand %p7132_p11, %p7129_p10 }
  0x3c   :  { %7137 = shalt.err (!%p7134_p12)
}
  0x3d   :  { %s7138_s0 = scalar_lea.vmem %s51_s20, 16384  ;;  %p7143_p0 = scmp.lt.s32.totalorder %s51_s20, %s51_s20 }
  0x3e   :  { %p7139_p13 = scmp.ne.s32.totalorder %s51_s20, %s7138_s0  ;;  %p7144_p1 = scmp.lt.s32.totalorder %s7138_s0, %s7138_s0 }
  0x40   :  { %p7145_p2 = por %p7144_p1, %p7143_p0 }
  0x42   :  { %p7146_p3 = pnand %p7145_p2, %p7139_p13 }
  0x44   :  { %7149 = shalt.err (!%p7146_p3)
}
  0x45   :  { %56 = dma.hbm_to_vmem [thread:$0]  %s7468_s3, 16384, %s51_s20, [#allocation6], %s7227_s27, %s7227_s27, %s7228_s28  }
  0x46   :  { %s7150_s16 = scalar_lea.hbm %s7472_s7, 16384 }
  0x47   :  { %p7151_p4 = scmp.ne.s32.totalorder %s7472_s7, %s7150_s16  ;;  %p7154_p5 = scmp.lt.u32.totalorder %s7150_s16, %s7472_s7 }
  0x49   :  { %p7156_p6 = pnand %p7154_p5, %p7151_p4 }
  0x4b   :  { %7159 = shalt.err (!%p7156_p6)
}
  0x4c   :  { %s7160_s21 = scalar_lea.vmem %s79_s22, 16384  ;;  %p7165_p8 = scmp.lt.s32.totalorder %s79_s22, %s79_s22 }
  0x4d   :  { %p7161_p7 = scmp.ne.s32.totalorder %s79_s22, %s7160_s21  ;;  %p7166_p9 = scmp.lt.s32.totalorder %s7160_s21, %s7160_s21 }
  0x4f   :  { %p7167_p10 = por %p7166_p9, %p7165_p8 }
  0x51   :  { %p7168_p11 = pnand %p7167_p10, %p7161_p7 }
  0x53   :  { %7171 = shalt.err (!%p7168_p11)
}
  0x54   :  { %84 = dma.hbm_to_vmem [thread:$0]  %s7472_s7, 16384, %s79_s22, [#allocation9], %s7227_s27, %s7227_s27, %s7228_s28  }
  0x55   :  { %s7233_s23 = smov [#allocation11]   ;;  %s7172_s25 = scalar_lea.hbm %s7474_s9, 4096 }
  0x56   :  { %s92_s1 = sshll.u32 %s7233_s23, 4  ;;  %p7173_p12 = scmp.ne.s32.totalorder %s7474_s9, %s7172_s25  ;;  %s93_s1 = int_to_ptr.vmem [resolvable:$true] %s92_s1 }
  0x57   :  { %p7176_p13 = scmp.lt.u32.totalorder %s7172_s25, %s7474_s9 }
  0x59   :  { %p7178_p0 = pnand %p7176_p13, %p7173_p12 }
  0x5b   :  { %7181 = shalt.err (!%p7178_p0)
}
  0x5c   :  { %s7182_s30 = scalar_lea.vmem %s93_s1, 4096  ;;  %p7187_p2 = scmp.lt.s32.totalorder %s93_s1, %s93_s1 }
  0x5d   :  { %p7183_p1 = scmp.ne.s32.totalorder %s93_s1, %s7182_s30  ;;  %p7188_p3 = scmp.lt.s32.totalorder %s7182_s30, %s7182_s30 }
  0x5f   :  { %p7189_p4 = por %p7188_p3, %p7187_p2 }
  0x61   :  { %p7190_p5 = pnand %p7189_p4, %p7183_p1 }
  0x63   :  { %7193 = shalt.err (!%p7190_p5)
}
  0x64   :  { %s7234_s7 = smov 64   ;;  %s7235_s27 = smov 4  }
  0x65   :  { %98 = dma.hbm_to_vmem [thread:$0]  %s7474_s9, 4096, %s93_s1, [#allocation12], %s7234_s7, %s7234_s7, %s7235_s27  }
  0x66   :  { %7216 = dma.done.wait [#allocation3], 1024  }
  0x67   :  { %7217 = vsyncadd [#allocation3], 4294966272 }
  0x68   :  { %7218 = dma.done.wait [#allocation6], 49152  }
  0x69   :  { %7219 = vsyncadd [#allocation6], 4294918144 }
  0x6a   :  { %7220 = dma.done.wait [#allocation9], 32768  }
  0x6b   :  { %7221 = vsyncadd [#allocation9], 4294934528 }
  0x6c   :  { %7222 = dma.done.wait [#allocation12], 4096  }
  0x6d   :  { %7223 = vsyncadd [#allocation12], 4294963200  ;;  %v6070_v0 = vld [vmem:[#allocation5 + $0x4] ss:$16 sps:$4 sm:$0xff]   ;;  %v6072_v1 = vld [vmem:[#allocation5 + $0xc] ss:$16 sps:$4 sm:$0xff]  }
  0x6e   :  { %1694 = vmatprep.subr.bf16.mxu0 %v6070_v0  ;;  %v6074_v2 = vld [vmem:[#allocation5] ss:$16 sps:$4 sm:$0xff]   ;;  %v6075_v3 = vld [vmem:[#allocation5 + $0x8] ss:$16 sps:$4 sm:$0xff]   ;;  %1858 = vmatprep.subr.bf16.mxu1 %v6072_v1  ;;  %v6076_v4 = vld [vmem:[#allocation5 + $0x24] ss:$16 sps:$4 sm:$0xff]  }
  0x6f   :  { %1695 = vmatpush1.bf16.msra.mxu0 %v6074_v2  ;;  %1859 = vmatpush1.bf16.msra.mxu1 %v6075_v3  ;;  %v6078_v5 = vld [vmem:[#allocation5 + $0x2c] ss:$16 sps:$4 sm:$0xff]   ;;  %v6080_v6 = vld [vmem:[#allocation5 + $0x20] ss:$16 sps:$4 sm:$0xff]   ;;  %v6081_v7 = vld [vmem:[#allocation5 + $0x28] ss:$16 sps:$4 sm:$0xff]  }
  0x70   :  { %1696 = vmatprep.subr.bf16.mxu0 %v6076_v4  ;;  %1860 = vmatprep.subr.bf16.mxu1 %v6078_v5  ;;  %v6082_v8 = vld [vmem:[#allocation5 + $0x44] ss:$16 sps:$4 sm:$0xff]   ;;  %v6084_v9 = vld [vmem:[#allocation5 + $0x4c] ss:$16 sps:$4 sm:$0xff]   ;;  %v6086_v10 = vld [vmem:[#allocation5 + $0x40] ss:$16 sps:$4 sm:$0xff]  }
  0x71   :  { %v6087_v11 = vld [vmem:[#allocation5 + $0x48] ss:$16 sps:$4 sm:$0xff]   ;;  %v6088_v12 = vld [vmem:[#allocation5 + $0x64] ss:$16 sps:$4 sm:$0xff]   ;;  %v6090_v13 = vld [vmem:[#allocation5 + $0x6c] ss:$16 sps:$4 sm:$0xff]  }
  0x72   :  { %v6092_v14 = vld [vmem:[#allocation5 + $0x60] ss:$16 sps:$4 sm:$0xff]   ;;  %v6093_v15 = vld [vmem:[#allocation5 + $0x68] ss:$16 sps:$4 sm:$0xff]   ;;  %v6094_v16 = vld [vmem:[#allocation5 + $0x84] ss:$16 sps:$4 sm:$0xff]  }
  0x73   :  { %1697 = vmatpush1.bf16.msra.mxu0 %v6080_v6  ;;  %1861 = vmatpush1.bf16.msra.mxu1 %v6081_v7  ;;  %v6096_v17 = vld [vmem:[#allocation5 + $0x8c] ss:$16 sps:$4 sm:$0xff]   ;;  %v6098_v18 = vld [vmem:[#allocation5 + $0x80] ss:$16 sps:$4 sm:$0xff]   ;;  %v6099_v19 = vld [vmem:[#allocation5 + $0x88] ss:$16 sps:$4 sm:$0xff]  }
  0x74   :  { %1698 = vmatprep.subr.bf16.mxu0 %v6082_v8  ;;  %1862 = vmatprep.subr.bf16.mxu1 %v6084_v9  ;;  %v6100_v20 = vld [vmem:[#allocation5 + $0xa4] ss:$16 sps:$4 sm:$0xff]   ;;  %v6102_v21 = vld [vmem:[#allocation5 + $0xac] ss:$16 sps:$4 sm:$0xff]   ;;  %v6104_v22 = vld [vmem:[#allocation5 + $0xa0] ss:$16 sps:$4 sm:$0xff]  }
  0x75   :  { %v6105_v23 = vld [vmem:[#allocation5 + $0xa8] ss:$16 sps:$4 sm:$0xff]   ;;  %v6106_v24 = vld [vmem:[#allocation5 + $0xc4] ss:$16 sps:$4 sm:$0xff]   ;;  %v6108_v25 = vld [vmem:[#allocation5 + $0xcc] ss:$16 sps:$4 sm:$0xff]  }
  0x76   :  { %v6110_v26 = vld [vmem:[#allocation5 + $0xc0] ss:$16 sps:$4 sm:$0xff]   ;;  %v6111_v27 = vld [vmem:[#allocation5 + $0xc8] ss:$16 sps:$4 sm:$0xff]   ;;  %v6112_v28 = vld [vmem:[#allocation5 + $0xe4] ss:$16 sps:$4 sm:$0xff]  }
  0x77   :  { %1699 = vmatpush1.bf16.msra.mxu0 %v6086_v10  ;;  %1863 = vmatpush1.bf16.msra.mxu1 %v6087_v11  ;;  %v6114_v29 = vld [vmem:[#allocation5 + $0xec] ss:$16 sps:$4 sm:$0xff]   ;;  %v6116_v30 = vld [vmem:[#allocation5 + $0xe0] ss:$16 sps:$4 sm:$0xff]   ;;  %v6117_v31 = vld [vmem:[#allocation5 + $0xe8] ss:$16 sps:$4 sm:$0xff]  }
  0x78   :  { %1700 = vmatprep.subr.bf16.mxu0 %v6088_v12  ;;  %1864 = vmatprep.subr.bf16.mxu1 %v6090_v13  ;;  %v6118_v32 = vld [vmem:[#allocation5 + $0x104] ss:$16 sps:$4 sm:$0xff]   ;;  %v6120_v33 = vld [vmem:[#allocation5 + $0x10c] ss:$16 sps:$4 sm:$0xff]   ;;  %v6122_v34 = vld [vmem:[#allocation5 + $0x100] ss:$16 sps:$4 sm:$0xff]  }
  0x79   :  { %v6123_v35 = vld [vmem:[#allocation5 + $0x108] ss:$16 sps:$4 sm:$0xff]   ;;  %v6124_v36 = vld [vmem:[#allocation5 + $0x124] ss:$16 sps:$4 sm:$0xff]   ;;  %v6126_v37 = vld [vmem:[#allocation5 + $0x12c] ss:$16 sps:$4 sm:$0xff]  }
  0x7a   :  { %v6128_v38 = vld [vmem:[#allocation5 + $0x120] ss:$16 sps:$4 sm:$0xff]   ;;  %v6129_v39 = vld [vmem:[#allocation5 + $0x128] ss:$16 sps:$4 sm:$0xff]   ;;  %v6130_v40 = vld [vmem:[#allocation5 + $0x144] ss:$16 sps:$4 sm:$0xff]  }
  0x7b   :  { %1701 = vmatpush1.bf16.msra.mxu0 %v6092_v14  ;;  %1865 = vmatpush1.bf16.msra.mxu1 %v6093_v15  ;;  %v6132_v41 = vld [vmem:[#allocation5 + $0x14c] ss:$16 sps:$4 sm:$0xff]   ;;  %v6134_v42 = vld [vmem:[#allocation5 + $0x140] ss:$16 sps:$4 sm:$0xff]   ;;  %v6135_v43 = vld [vmem:[#allocation5 + $0x148] ss:$16 sps:$4 sm:$0xff]  }
  0x7c   :  { %1702 = vmatprep.subr.bf16.mxu0 %v6094_v16  ;;  %1866 = vmatprep.subr.bf16.mxu1 %v6096_v17  ;;  %v6136_v44 = vld [vmem:[#allocation5 + $0x164] ss:$16 sps:$4 sm:$0xff]   ;;  %v6138_v45 = vld [vmem:[#allocation5 + $0x16c] ss:$16 sps:$4 sm:$0xff]   ;;  %v6140_v47 = vld [vmem:[#allocation5 + $0x160] ss:$16 sps:$4 sm:$0xff]  }
  0x7d   :  { %v121_v46 = vld [vmem:[#allocation2 + $0x8] sm:$0xff]  ;;  %v6142_v50 = vld [vmem:[#allocation5 + $0x184] ss:$16 sps:$4 sm:$0xff]   ;;  %v6146_v52 = vld [vmem:[#allocation5 + $0x180] ss:$16 sps:$4 sm:$0xff]   ;;  %s7236_s13 = smov [#allocation13]  }
  0x7e   :  { %v129_v48 = vpack.c.bf16 %v121_v46, %v121_v46  ;;  %v6141_v49 = vld [vmem:[#allocation5 + $0x168] ss:$16 sps:$4 sm:$0xff]   ;;  %v6144_v51 = vld [vmem:[#allocation5 + $0x18c] ss:$16 sps:$4 sm:$0xff]   ;;  %v6148_v54 = vld [vmem:[#allocation5 + $0x1a4] ss:$16 sps:$4 sm:$0xff]  }
  0x7f   :  { %1703 = vmatpush1.bf16.msra.mxu0 %v6098_v18  ;;  %1867 = vmatpush1.bf16.msra.mxu1 %v6099_v19  ;;  %v6147_v53 = vld [vmem:[#allocation5 + $0x188] ss:$16 sps:$4 sm:$0xff]   ;;  %v6150_v55 = vld [vmem:[#allocation5 + $0x1ac] ss:$16 sps:$4 sm:$0xff]   ;;  %v6152_v56 = vld [vmem:[#allocation5 + $0x1a0] ss:$16 sps:$4 sm:$0xff]  }
  0x80   :  { %1704 = vmatprep.subr.bf16.mxu0 %v6100_v20  ;;  %1868 = vmatprep.subr.bf16.mxu1 %v6102_v21  ;;  %v6153_v57 = vld [vmem:[#allocation5 + $0x1a8] ss:$16 sps:$4 sm:$0xff]   ;;  %v6154_v58 = vld [vmem:[#allocation5 + $0x1c4] ss:$16 sps:$4 sm:$0xff]   ;;  %v6156_v59 = vld [vmem:[#allocation5 + $0x1cc] ss:$16 sps:$4 sm:$0xff]  }
  0x81   :  { %1726 = vmatprep.mubr.bf16.mxu0 %v129_v48  ;;  %1890 = vmatprep.mubr.bf16.mxu1 %v129_v48  ;;  %v6158_v60 = vld [vmem:[#allocation5 + $0x1c0] ss:$16 sps:$4 sm:$0xff]   ;;  %v6159_v61 = vld [vmem:[#allocation5 + $0x1c8] ss:$16 sps:$4 sm:$0xff]   ;;  %v6160_v62 = vld [vmem:[#allocation5 + $0x1e4] ss:$16 sps:$4 sm:$0xff]  }
  0x82   :  { %v6162_v63 = vld [vmem:[#allocation5 + $0x1ec] ss:$16 sps:$4 sm:$0xff]   ;;  %v6164_v0 = vld [vmem:[#allocation5 + $0x1e0] ss:$16 sps:$4 sm:$0xff]   ;;  %v6165_v1 = vld [vmem:[#allocation5 + $0x1e8] ss:$16 sps:$4 sm:$0xff]  }
  0x83   :  { %1705 = vmatpush1.bf16.msra.mxu0 %v6104_v22  ;;  %1869 = vmatpush1.bf16.msra.mxu1 %v6105_v23  ;;  %v120_v2 = vld [vmem:[#allocation2] sm:$0xff]  ;;  %v6171_v4 = vld [vmem:[#allocation5 + $0x20c] ss:$16 sps:$4 sm:$0xff]   ;;  %v6169_v7 = vld [vmem:[#allocation5 + $0x208] ss:$16 sps:$4 sm:$0xff]   ;;  %s5266_s19 = sshll.u32 %s7236_s13, 4  ;;  %s5267_s19 = int_to_ptr.vmem [resolvable:$true] %s5266_s19 }
  0x84   :  { %1706 = vmatprep.subr.bf16.mxu0 %v6106_v24  ;;  %1870 = vmatprep.subr.bf16.mxu1 %v6108_v25  ;;  %v6168_v3 = vld [vmem:[#allocation5 + $0x204] ss:$16 sps:$4 sm:$0xff]   ;;  %v128_v5 = vpack.c.bf16 %v120_v2, %v120_v2  ;;  %v6166_v6 = vld [vmem:[#allocation5 + $0x200] ss:$16 sps:$4 sm:$0xff]   ;;  %v6177_v9 = vld [vmem:[#allocation5 + $0x22c] ss:$16 sps:$4 sm:$0xff]   ;;  %p7199_p7 = scmp.lt.s32.totalorder %s5267_s19, %s5267_s19 }
  0x85   :  { %v6174_v8 = vld [vmem:[#allocation5 + $0x224] ss:$16 sps:$4 sm:$0xff]   ;;  %v6172_v10 = vld [vmem:[#allocation5 + $0x220] ss:$16 sps:$4 sm:$0xff]   ;;  %v6175_v11 = vld [vmem:[#allocation5 + $0x228] ss:$16 sps:$4 sm:$0xff]  }
  0x86   :  { %v6180_v12 = vld [vmem:[#allocation5 + $0x244] ss:$16 sps:$4 sm:$0xff]   ;;  %v6183_v13 = vld [vmem:[#allocation5 + $0x24c] ss:$16 sps:$4 sm:$0xff]   ;;  %v6178_v14 = vld [vmem:[#allocation5 + $0x240] ss:$16 sps:$4 sm:$0xff]  }
  0x87   :  { %1707 = vmatpush1.bf16.msra.mxu0 %v6110_v26  ;;  %1871 = vmatpush1.bf16.msra.mxu1 %v6111_v27  ;;  %v6181_v15 = vld [vmem:[#allocation5 + $0x248] ss:$16 sps:$4 sm:$0xff]   ;;  %v6186_v16 = vld [vmem:[#allocation5 + $0x264] ss:$16 sps:$4 sm:$0xff]   ;;  %v6189_v17 = vld [vmem:[#allocation5 + $0x26c] ss:$16 sps:$4 sm:$0xff]  }
  0x88   :  { %1708 = vmatprep.subr.bf16.mxu0 %v6112_v28  ;;  %1872 = vmatprep.subr.bf16.mxu1 %v6114_v29  ;;  %v6184_v18 = vld [vmem:[#allocation5 + $0x260] ss:$16 sps:$4 sm:$0xff]   ;;  %v6187_v19 = vld [vmem:[#allocation5 + $0x268] ss:$16 sps:$4 sm:$0xff]   ;;  %v6192_v20 = vld [vmem:[#allocation5 + $0x284] ss:$16 sps:$4 sm:$0xff]  }
  0x89   :  { %v6195_v21 = vld [vmem:[#allocation5 + $0x28c] ss:$16 sps:$4 sm:$0xff]   ;;  %v6190_v22 = vld [vmem:[#allocation5 + $0x280] ss:$16 sps:$4 sm:$0xff]   ;;  %v6193_v23 = vld [vmem:[#allocation5 + $0x288] ss:$16 sps:$4 sm:$0xff]  }
  0x8a   :  { %v6198_v24 = vld [vmem:[#allocation5 + $0x2a4] ss:$16 sps:$4 sm:$0xff]   ;;  %v6201_v25 = vld [vmem:[#allocation5 + $0x2ac] ss:$16 sps:$4 sm:$0xff]   ;;  %v6196_v26 = vld [vmem:[#allocation5 + $0x2a0] ss:$16 sps:$4 sm:$0xff]  }
  0x8b   :  { %1709 = vmatpush1.bf16.msra.mxu0 %v6116_v30  ;;  %1873 = vmatpush1.bf16.msra.mxu1 %v6117_v31  ;;  %v6199_v27 = vld [vmem:[#allocation5 + $0x2a8] ss:$16 sps:$4 sm:$0xff]   ;;  %v6204_v28 = vld [vmem:[#allocation5 + $0x2c4] ss:$16 sps:$4 sm:$0xff]   ;;  %v6207_v29 = vld [vmem:[#allocation5 + $0x2cc] ss:$16 sps:$4 sm:$0xff]  }
  0x8c   :  { %1710 = vmatprep.subr.bf16.mxu0 %v6118_v32  ;;  %1874 = vmatprep.subr.bf16.mxu1 %v6120_v33  ;;  %v123_v30 = vld [vmem:[#allocation2 + $0x18] sm:$0xff]  ;;  %v6202_v31 = vld [vmem:[#allocation5 + $0x2c0] ss:$16 sps:$4 sm:$0xff]   ;;  %v6228_v46 = vld [vmem:[#allocation5 + $0x344] ss:$16 sps:$4 sm:$0xff]   ;;  %s7194_s21 = scalar_lea.vmem %s5267_s19, 128 }
  0x8d   :  { %v131_v32 = vpack.c.bf16 %v123_v30, %v123_v30  ;;  %v6205_v33 = vld [vmem:[#allocation5 + $0x2c8] ss:$16 sps:$4 sm:$0xff]   ;;  %v6226_v48 = vld [vmem:[#allocation5 + $0x340] ss:$16 sps:$4 sm:$0xff]   ;;  %v6258_v2 = vld [vmem:[#allocation5 + $0x3e4] ss:$16 sps:$4 sm:$0xff]   ;;  %p7195_p6 = scmp.ne.s32.totalorder %s5267_s19, %s7194_s21  ;;  %p7200_p8 = scmp.lt.s32.totalorder %s7194_s21, %s7194_s21 }
  0x8e   :  { %v6294_v30 = vld [vmem:[#allocation5 + $0x4a4] ss:$16 sps:$4 sm:$0xff]  }
  0x8f   :  { %1711 = vmatpush1.bf16.msra.mxu0 %v6122_v34  ;;  %1875 = vmatpush1.bf16.msra.mxu1 %v6123_v35  ;;  %v6210_v34 = vld [vmem:[#allocation5 + $0x2e4] ss:$16 sps:$4 sm:$0xff]   ;;  %v6213_v35 = vld [vmem:[#allocation5 + $0x2ec] ss:$16 sps:$4 sm:$0xff]   ;;  %p7201_p9 = por %p7200_p8, %p7199_p7 }
  0x90   :  { %1712 = vmatprep.subr.bf16.mxu0 %v6124_v36  ;;  %1876 = vmatprep.subr.bf16.mxu1 %v6126_v37  ;;  %v6208_v36 = vld [vmem:[#allocation5 + $0x2e0] ss:$16 sps:$4 sm:$0xff]   ;;  %v6211_v37 = vld [vmem:[#allocation5 + $0x2e8] ss:$16 sps:$4 sm:$0xff]  }
  0x91   :  { %p7202_p10 = pnand %p7201_p9, %p7195_p6 }
  0x93   :  { %1713 = vmatpush1.bf16.msra.mxu0 %v6128_v38  ;;  %1877 = vmatpush1.bf16.msra.mxu1 %v6129_v39  ;;  %v6216_v38 = vld [vmem:[#allocation5 + $0x304] ss:$16 sps:$4 sm:$0xff]   ;;  %v6219_v39 = vld [vmem:[#allocation5 + $0x30c] ss:$16 sps:$4 sm:$0xff]  }
  0x94   :  { %1714 = vmatprep.subr.bf16.mxu0 %v6130_v40  ;;  %1878 = vmatprep.subr.bf16.mxu1 %v6132_v41  ;;  %v6214_v40 = vld [vmem:[#allocation5 + $0x300] ss:$16 sps:$4 sm:$0xff]   ;;  %v6217_v41 = vld [vmem:[#allocation5 + $0x308] ss:$16 sps:$4 sm:$0xff]  }
  0x97   :  { %1715 = vmatpush1.bf16.msra.mxu0 %v6134_v42  ;;  %1879 = vmatpush1.bf16.msra.mxu1 %v6135_v43  ;;  %v6222_v42 = vld [vmem:[#allocation5 + $0x324] ss:$16 sps:$4 sm:$0xff]   ;;  %v6225_v43 = vld [vmem:[#allocation5 + $0x32c] ss:$16 sps:$4 sm:$0xff]  }
  0x98   :  { %1716 = vmatprep.subr.bf16.mxu0 %v6136_v44  ;;  %1880 = vmatprep.subr.bf16.mxu1 %v6138_v45  ;;  %v6220_v44 = vld [vmem:[#allocation5 + $0x320] ss:$16 sps:$4 sm:$0xff]   ;;  %v6223_v45 = vld [vmem:[#allocation5 + $0x328] ss:$16 sps:$4 sm:$0xff]  }
  0x9b   :  { %1717 = vmatpush1.bf16.msra.mxu0 %v6140_v47  ;;  %1881 = vmatpush1.bf16.msra.mxu1 %v6141_v49  ;;  %v6231_v47 = vld [vmem:[#allocation5 + $0x34c] ss:$16 sps:$4 sm:$0xff]   ;;  %v6229_v49 = vld [vmem:[#allocation5 + $0x348] ss:$16 sps:$4 sm:$0xff]  }
  0x9c   :  { %1718 = vmatprep.subr.bf16.mxu0 %v6142_v50  ;;  %1882 = vmatprep.subr.bf16.mxu1 %v6144_v51  ;;  %v6234_v50 = vld [vmem:[#allocation5 + $0x364] ss:$16 sps:$4 sm:$0xff]   ;;  %v6237_v51 = vld [vmem:[#allocation5 + $0x36c] ss:$16 sps:$4 sm:$0xff]  }
  0x9f   :  { %1719 = vmatpush1.bf16.msra.mxu0 %v6146_v52  ;;  %1883 = vmatpush1.bf16.msra.mxu1 %v6147_v53  ;;  %v6232_v52 = vld [vmem:[#allocation5 + $0x360] ss:$16 sps:$4 sm:$0xff]   ;;  %v6235_v53 = vld [vmem:[#allocation5 + $0x368] ss:$16 sps:$4 sm:$0xff]  }
  0xa0   :  { %1720 = vmatprep.subr.bf16.mxu0 %v6148_v54  ;;  %1884 = vmatprep.subr.bf16.mxu1 %v6150_v55  ;;  %v6240_v54 = vld [vmem:[#allocation5 + $0x384] ss:$16 sps:$4 sm:$0xff]   ;;  %v6243_v55 = vld [vmem:[#allocation5 + $0x38c] ss:$16 sps:$4 sm:$0xff]  }
  0xa3   :  { %1721 = vmatpush1.bf16.msra.mxu0 %v6152_v56  ;;  %1885 = vmatpush1.bf16.msra.mxu1 %v6153_v57  ;;  %v6238_v56 = vld [vmem:[#allocation5 + $0x380] ss:$16 sps:$4 sm:$0xff]   ;;  %v6241_v57 = vld [vmem:[#allocation5 + $0x388] ss:$16 sps:$4 sm:$0xff]  }
  0xa4   :  { %1722 = vmatprep.subr.bf16.mxu0 %v6154_v58  ;;  %1886 = vmatprep.subr.bf16.mxu1 %v6156_v59  ;;  %v6246_v58 = vld [vmem:[#allocation5 + $0x3a4] ss:$16 sps:$4 sm:$0xff]   ;;  %v6249_v59 = vld [vmem:[#allocation5 + $0x3ac] ss:$16 sps:$4 sm:$0xff]  }
  0xa7   :  { %1723 = vmatpush1.bf16.msra.mxu0 %v6158_v60  ;;  %1887 = vmatpush1.bf16.msra.mxu1 %v6159_v61  ;;  %v6244_v60 = vld [vmem:[#allocation5 + $0x3a0] ss:$16 sps:$4 sm:$0xff]   ;;  %v6247_v61 = vld [vmem:[#allocation5 + $0x3a8] ss:$16 sps:$4 sm:$0xff]  }
  0xa8   :  { %1724 = vmatprep.subr.bf16.mxu0 %v6160_v62  ;;  %1888 = vmatprep.subr.bf16.mxu1 %v6162_v63  ;;  %v6252_v62 = vld [vmem:[#allocation5 + $0x3c4] ss:$16 sps:$4 sm:$0xff]   ;;  %v6255_v63 = vld [vmem:[#allocation5 + $0x3cc] ss:$16 sps:$4 sm:$0xff]  }
  0xab   :  { %1725 = vmatpush1.bf16.msra.mxu0 %v6164_v0  ;;  %1889 = vmatpush1.bf16.msra.mxu1 %v6165_v1  ;;  %v6250_v0 = vld [vmem:[#allocation5 + $0x3c0] ss:$16 sps:$4 sm:$0xff]   ;;  %v6253_v1 = vld [vmem:[#allocation5 + $0x3c8] ss:$16 sps:$4 sm:$0xff]  }
  0xac   :  { %1735 = vmatprep.subr.bf16.mxu0 %v6168_v3  ;;  %1899 = vmatprep.subr.bf16.mxu1 %v6171_v4  ;;  %v6261_v3 = vld [vmem:[#allocation5 + $0x3ec] ss:$16 sps:$4 sm:$0xff]   ;;  %v6256_v4 = vld [vmem:[#allocation5 + $0x3e0] ss:$16 sps:$4 sm:$0xff]  }
  0xae   :  { %1727 = vmatmul.mubr.bf16.vlgmr.msra.gmra.mrb[0].mxu0 %v128_v5  ;;  %1891 = vmatmul.mubr.bf16.vlgmr.msra.gmra.mrb[0].mxu1 %v128_v5  ;;  %v6259_v5 = vld [vmem:[#allocation5 + $0x3e8] ss:$16 sps:$4 sm:$0xff]  }
  0xaf   :  { %1736 = vmatpush1.bf16.msra.mxu0 %v6166_v6  ;;  %1900 = vmatpush1.bf16.msra.mxu1 %v6169_v7  ;;  %v6264_v6 = vld [vmem:[#allocation5 + $0x404] ss:$16 sps:$4 sm:$0xff]  }
  0xb0   :  { %1737 = vmatprep.subr.bf16.mxu0 %v6174_v8  ;;  %1901 = vmatprep.subr.bf16.mxu1 %v6177_v9  ;;  %v122_v7 = vld [vmem:[#allocation2 + $0x10] sm:$0xff]  ;;  %v6267_v8 = vld [vmem:[#allocation5 + $0x40c] ss:$16 sps:$4 sm:$0xff]  }
  0xb1   :  { %1767 = vmatprep.mubr.bf16.mxu0 %v131_v32  ;;  %1931 = vmatprep.mubr.bf16.mxu1 %v131_v32  ;;  %v6262_v9 = vld [vmem:[#allocation5 + $0x400] ss:$16 sps:$4 sm:$0xff]  }
  0xb2   :  { %v6292_v32 = vld [vmem:[#allocation5 + $0x4a0] ss:$16 sps:$4 sm:$0xff]  }
  0xb3   :  { %1738 = vmatpush1.bf16.msra.mxu0 %v6172_v10  ;;  %1902 = vmatpush1.bf16.msra.mxu1 %v6175_v11  ;;  %v6265_v10 = vld [vmem:[#allocation5 + $0x408] ss:$16 sps:$4 sm:$0xff]   ;;  %v130_v11 = vpack.c.bf16 %v122_v7, %v122_v7  ;;  %v6357_v7 = vld [vmem:[#allocation5 + $0x5ec] ss:$16 sps:$4 sm:$0xff]  }
  0xb4   :  { %1739 = vmatprep.subr.bf16.mxu0 %v6180_v12  ;;  %1903 = vmatprep.subr.bf16.mxu1 %v6183_v13  ;;  %v6270_v12 = vld [vmem:[#allocation5 + $0x424] ss:$16 sps:$4 sm:$0xff]   ;;  %v6273_v13 = vld [vmem:[#allocation5 + $0x42c] ss:$16 sps:$4 sm:$0xff]  }
  0xb7   :  { %1740 = vmatpush1.bf16.msra.mxu0 %v6178_v14  ;;  %1904 = vmatpush1.bf16.msra.mxu1 %v6181_v15  ;;  %v125_v14 = vld [vmem:[#allocation2 + $0x28] sm:$0xff] }
  0xb8   :  { %1741 = vmatprep.subr.bf16.mxu0 %v6186_v16  ;;  %1905 = vmatprep.subr.bf16.mxu1 %v6189_v17  ;;  %v133_v15 = vpack.c.bf16 %v125_v14, %v125_v14  ;;  %v6268_v16 = vld [vmem:[#allocation5 + $0x420] ss:$16 sps:$4 sm:$0xff]   ;;  %v6271_v17 = vld [vmem:[#allocation5 + $0x428] ss:$16 sps:$4 sm:$0xff]  }
  0xb9   :  { %v6361_v14 = vld [vmem:[#allocation5 + $0x608] ss:$16 sps:$4 sm:$0xff]  }
  0xbb   :  { %1742 = vmatpush1.bf16.msra.mxu0 %v6184_v18  ;;  %1906 = vmatpush1.bf16.msra.mxu1 %v6187_v19  ;;  %v6276_v18 = vld [vmem:[#allocation5 + $0x444] ss:$16 sps:$4 sm:$0xff]   ;;  %v6279_v19 = vld [vmem:[#allocation5 + $0x44c] ss:$16 sps:$4 sm:$0xff]  }
  0xbc   :  { %1743 = vmatprep.subr.bf16.mxu0 %v6192_v20  ;;  %1907 = vmatprep.subr.bf16.mxu1 %v6195_v21  ;;  %v6274_v20 = vld [vmem:[#allocation5 + $0x440] ss:$16 sps:$4 sm:$0xff]   ;;  %v6277_v21 = vld [vmem:[#allocation5 + $0x448] ss:$16 sps:$4 sm:$0xff]  }
  0xbf   :  { %1744 = vmatpush1.bf16.msra.mxu0 %v6190_v22  ;;  %1908 = vmatpush1.bf16.msra.mxu1 %v6193_v23  ;;  %v6282_v22 = vld [vmem:[#allocation5 + $0x464] ss:$16 sps:$4 sm:$0xff]   ;;  %v6285_v23 = vld [vmem:[#allocation5 + $0x46c] ss:$16 sps:$4 sm:$0xff]  }
  0xc0   :  { %1745 = vmatprep.subr.bf16.mxu0 %v6198_v24  ;;  %1909 = vmatprep.subr.bf16.mxu1 %v6201_v25  ;;  %v6280_v24 = vld [vmem:[#allocation5 + $0x460] ss:$16 sps:$4 sm:$0xff]   ;;  %v6283_v25 = vld [vmem:[#allocation5 + $0x468] ss:$16 sps:$4 sm:$0xff]  }
  0xc3   :  { %1746 = vmatpush1.bf16.msra.mxu0 %v6196_v26  ;;  %1910 = vmatpush1.bf16.msra.mxu1 %v6199_v27  ;;  %v6288_v26 = vld [vmem:[#allocation5 + $0x484] ss:$16 sps:$4 sm:$0xff]   ;;  %v6291_v27 = vld [vmem:[#allocation5 + $0x48c] ss:$16 sps:$4 sm:$0xff]  }
  0xc4   :  { %1747 = vmatprep.subr.bf16.mxu0 %v6204_v28  ;;  %1911 = vmatprep.subr.bf16.mxu1 %v6207_v29  ;;  %v6286_v28 = vld [vmem:[#allocation5 + $0x480] ss:$16 sps:$4 sm:$0xff]   ;;  %v6289_v29 = vld [vmem:[#allocation5 + $0x488] ss:$16 sps:$4 sm:$0xff]  }
  0xc7   :  { %1748 = vmatpush1.bf16.msra.mxu0 %v6202_v31  ;;  %1912 = vmatpush1.bf16.msra.mxu1 %v6205_v33  ;;  %v6297_v31 = vld [vmem:[#allocation5 + $0x4ac] ss:$16 sps:$4 sm:$0xff]   ;;  %v6295_v33 = vld [vmem:[#allocation5 + $0x4a8] ss:$16 sps:$4 sm:$0xff]  }
  0xc8   :  { %1749 = vmatprep.subr.bf16.mxu0 %v6210_v34  ;;  %1913 = vmatprep.subr.bf16.mxu1 %v6213_v35  ;;  %v6300_v34 = vld [vmem:[#allocation5 + $0x4c4] ss:$16 sps:$4 sm:$0xff]   ;;  %v6303_v35 = vld [vmem:[#allocation5 + $0x4cc] ss:$16 sps:$4 sm:$0xff]  }
  0xcb   :  { %1750 = vmatpush1.bf16.msra.mxu0 %v6208_v36  ;;  %1914 = vmatpush1.bf16.msra.mxu1 %v6211_v37  ;;  %v6298_v36 = vld [vmem:[#allocation5 + $0x4c0] ss:$16 sps:$4 sm:$0xff]   ;;  %v6301_v37 = vld [vmem:[#allocation5 + $0x4c8] ss:$16 sps:$4 sm:$0xff]  }
  0xcc   :  { %1751 = vmatprep.subr.bf16.mxu0 %v6216_v38  ;;  %1915 = vmatprep.subr.bf16.mxu1 %v6219_v39  ;;  %v6306_v38 = vld [vmem:[#allocation5 + $0x4e4] ss:$16 sps:$4 sm:$0xff]   ;;  %v6309_v39 = vld [vmem:[#allocation5 + $0x4ec] ss:$16 sps:$4 sm:$0xff]  }
  0xcf   :  { %1752 = vmatpush1.bf16.msra.mxu0 %v6214_v40  ;;  %1916 = vmatpush1.bf16.msra.mxu1 %v6217_v41  ;;  %v6304_v40 = vld [vmem:[#allocation5 + $0x4e0] ss:$16 sps:$4 sm:$0xff]   ;;  %v6307_v41 = vld [vmem:[#allocation5 + $0x4e8] ss:$16 sps:$4 sm:$0xff]  }
  0xd0   :  { %1753 = vmatprep.subr.bf16.mxu0 %v6222_v42  ;;  %1917 = vmatprep.subr.bf16.mxu1 %v6225_v43  ;;  %v6312_v42 = vld [vmem:[#allocation5 + $0x504] ss:$16 sps:$4 sm:$0xff]   ;;  %v6315_v43 = vld [vmem:[#allocation5 + $0x50c] ss:$16 sps:$4 sm:$0xff]  }
  0xd3   :  { %1754 = vmatpush1.bf16.msra.mxu0 %v6220_v44  ;;  %1918 = vmatpush1.bf16.msra.mxu1 %v6223_v45  ;;  %v6310_v44 = vld [vmem:[#allocation5 + $0x500] ss:$16 sps:$4 sm:$0xff]   ;;  %v6313_v45 = vld [vmem:[#allocation5 + $0x508] ss:$16 sps:$4 sm:$0xff]  }
  0xd4   :  { %1755 = vmatprep.subr.bf16.mxu0 %v6228_v46  ;;  %1919 = vmatprep.subr.bf16.mxu1 %v6231_v47  ;;  %v6318_v46 = vld [vmem:[#allocation5 + $0x524] ss:$16 sps:$4 sm:$0xff]   ;;  %v6321_v47 = vld [vmem:[#allocation5 + $0x52c] ss:$16 sps:$4 sm:$0xff]  }
  0xd7   :  { %1756 = vmatpush1.bf16.msra.mxu0 %v6226_v48  ;;  %1920 = vmatpush1.bf16.msra.mxu1 %v6229_v49  ;;  %v6316_v48 = vld [vmem:[#allocation5 + $0x520] ss:$16 sps:$4 sm:$0xff]   ;;  %v6319_v49 = vld [vmem:[#allocation5 + $0x528] ss:$16 sps:$4 sm:$0xff]  }
  0xd8   :  { %1757 = vmatprep.subr.bf16.mxu0 %v6234_v50  ;;  %1921 = vmatprep.subr.bf16.mxu1 %v6237_v51  ;;  %v6324_v50 = vld [vmem:[#allocation5 + $0x544] ss:$16 sps:$4 sm:$0xff]   ;;  %v6327_v51 = vld [vmem:[#allocation5 + $0x54c] ss:$16 sps:$4 sm:$0xff]  }
  0xdb   :  { %1758 = vmatpush1.bf16.msra.mxu0 %v6232_v52  ;;  %1922 = vmatpush1.bf16.msra.mxu1 %v6235_v53  ;;  %v6322_v52 = vld [vmem:[#allocation5 + $0x540] ss:$16 sps:$4 sm:$0xff]   ;;  %v6325_v53 = vld [vmem:[#allocation5 + $0x548] ss:$16 sps:$4 sm:$0xff]  }
  0xdc   :  { %1759 = vmatprep.subr.bf16.mxu0 %v6240_v54  ;;  %1923 = vmatprep.subr.bf16.mxu1 %v6243_v55  ;;  %v6330_v54 = vld [vmem:[#allocation5 + $0x564] ss:$16 sps:$4 sm:$0xff]   ;;  %v6333_v55 = vld [vmem:[#allocation5 + $0x56c] ss:$16 sps:$4 sm:$0xff]  }
  0xdf   :  { %1760 = vmatpush1.bf16.msra.mxu0 %v6238_v56  ;;  %1924 = vmatpush1.bf16.msra.mxu1 %v6241_v57  ;;  %v6328_v56 = vld [vmem:[#allocation5 + $0x560] ss:$16 sps:$4 sm:$0xff]   ;;  %v6331_v57 = vld [vmem:[#allocation5 + $0x568] ss:$16 sps:$4 sm:$0xff]  }
  0xe0   :  { %1761 = vmatprep.subr.bf16.mxu0 %v6246_v58  ;;  %1925 = vmatprep.subr.bf16.mxu1 %v6249_v59  ;;  %v6336_v58 = vld [vmem:[#allocation5 + $0x584] ss:$16 sps:$4 sm:$0xff]   ;;  %v6339_v59 = vld [vmem:[#allocation5 + $0x58c] ss:$16 sps:$4 sm:$0xff]  }
  0xe3   :  { %1762 = vmatpush1.bf16.msra.mxu0 %v6244_v60  ;;  %1926 = vmatpush1.bf16.msra.mxu1 %v6247_v61  ;;  %v6334_v60 = vld [vmem:[#allocation5 + $0x580] ss:$16 sps:$4 sm:$0xff]   ;;  %v6337_v61 = vld [vmem:[#allocation5 + $0x588] ss:$16 sps:$4 sm:$0xff]  }
  0xe4   :  { %1763 = vmatprep.subr.bf16.mxu0 %v6252_v62  ;;  %1927 = vmatprep.subr.bf16.mxu1 %v6255_v63  ;;  %v6342_v62 = vld [vmem:[#allocation5 + $0x5a4] ss:$16 sps:$4 sm:$0xff]   ;;  %v6345_v63 = vld [vmem:[#allocation5 + $0x5ac] ss:$16 sps:$4 sm:$0xff]  }
  0xe7   :  { %1764 = vmatpush1.bf16.msra.mxu0 %v6250_v0  ;;  %1928 = vmatpush1.bf16.msra.mxu1 %v6253_v1  ;;  %v6340_v0 = vld [vmem:[#allocation5 + $0x5a0] ss:$16 sps:$4 sm:$0xff]   ;;  %v6343_v1 = vld [vmem:[#allocation5 + $0x5a8] ss:$16 sps:$4 sm:$0xff]  }
  0xe8   :  { %1765 = vmatprep.subr.bf16.mxu0 %v6258_v2  ;;  %1929 = vmatprep.subr.bf16.mxu1 %v6261_v3  ;;  %v6348_v2 = vld [vmem:[#allocation5 + $0x5c4] ss:$16 sps:$4 sm:$0xff]   ;;  %v6351_v3 = vld [vmem:[#allocation5 + $0x5cc] ss:$16 sps:$4 sm:$0xff]  }
  0xeb   :  { %1766 = vmatpush1.bf16.msra.mxu0 %v6256_v4  ;;  %1930 = vmatpush1.bf16.msra.mxu1 %v6259_v5  ;;  %v6346_v4 = vld [vmem:[#allocation5 + $0x5c0] ss:$16 sps:$4 sm:$0xff]   ;;  %v6349_v5 = vld [vmem:[#allocation5 + $0x5c8] ss:$16 sps:$4 sm:$0xff]  }
  0xec   :  { %1776 = vmatprep.subr.bf16.mxu0 %v6264_v6  ;;  %1940 = vmatprep.subr.bf16.mxu1 %v6267_v8  ;;  %v6354_v6 = vld [vmem:[#allocation5 + $0x5e4] ss:$16 sps:$4 sm:$0xff]   ;;  %v6352_v8 = vld [vmem:[#allocation5 + $0x5e0] ss:$16 sps:$4 sm:$0xff]  }
  0xee   :  { %1768 = vmatmul.mubr.bf16.vlgmr.msra.gmra.mrb[0].mxu0 %v130_v11  ;;  %1932 = vmatmul.mubr.bf16.vlgmr.msra.gmra.mrb[0].mxu1 %v130_v11  ;;  %v124_v11 = vld [vmem:[#allocation2 + $0x20] sm:$0xff] }
  0xef   :  { %1777 = vmatpush1.bf16.msra.mxu0 %v6262_v9  ;;  %1941 = vmatpush1.bf16.msra.mxu1 %v6265_v10  ;;  %v6355_v9 = vld [vmem:[#allocation5 + $0x5e8] ss:$16 sps:$4 sm:$0xff]   ;;  %v6360_v10 = vld [vmem:[#allocation5 + $0x604] ss:$16 sps:$4 sm:$0xff]  }
  0xf0   :  { %1778 = vmatprep.subr.bf16.mxu0 %v6270_v12  ;;  %1942 = vmatprep.subr.bf16.mxu1 %v6273_v13  ;;  %v6363_v12 = vld [vmem:[#allocation5 + $0x60c] ss:$16 sps:$4 sm:$0xff]   ;;  %v6358_v13 = vld [vmem:[#allocation5 + $0x600] ss:$16 sps:$4 sm:$0xff]  }
  0xf1   :  { %1808 = vmatprep.mubr.bf16.mxu0 %v133_v15  ;;  %1972 = vmatprep.mubr.bf16.mxu1 %v133_v15  ;;  %v132_v15 = vpack.c.bf16 %v124_v11, %v124_v11  ;;  %v6453_v11 = vld [vmem:[#allocation5 + $0x7ec] ss:$16 sps:$4 sm:$0xff]  }
  0xf3   :  { %1779 = vmatpush1.bf16.msra.mxu0 %v6268_v16  ;;  %1943 = vmatpush1.bf16.msra.mxu1 %v6271_v17  ;;  %v127_v16 = vld [vmem:[#allocation2 + $0x38] sm:$0xff]  ;;  %v6366_v17 = vld [vmem:[#allocation5 + $0x624] ss:$16 sps:$4 sm:$0xff]  }
  0xf4   :  { %1780 = vmatprep.subr.bf16.mxu0 %v6276_v18  ;;  %1944 = vmatprep.subr.bf16.mxu1 %v6279_v19  ;;  %v6369_v18 = vld [vmem:[#allocation5 + $0x62c] ss:$16 sps:$4 sm:$0xff]   ;;  %v135_v19 = vpack.c.bf16 %v127_v16, %v127_v16 }
  0xf5   :  { %v6459_v16 = vld [vmem:[#allocation7 + $0xc] ss:$16 sps:$4 sm:$0xff]  }
  0xf7   :  { %1781 = vmatpush1.bf16.msra.mxu0 %v6274_v20  ;;  %1945 = vmatpush1.bf16.msra.mxu1 %v6277_v21  ;;  %v6364_v20 = vld [vmem:[#allocation5 + $0x620] ss:$16 sps:$4 sm:$0xff]   ;;  %v6367_v21 = vld [vmem:[#allocation5 + $0x628] ss:$16 sps:$4 sm:$0xff]  }
  0xf8   :  { %1782 = vmatprep.subr.bf16.mxu0 %v6282_v22  ;;  %1946 = vmatprep.subr.bf16.mxu1 %v6285_v23  ;;  %v6372_v22 = vld [vmem:[#allocation5 + $0x644] ss:$16 sps:$4 sm:$0xff]   ;;  %v6375_v23 = vld [vmem:[#allocation5 + $0x64c] ss:$16 sps:$4 sm:$0xff]  }
  0xfb   :  { %1783 = vmatpush1.bf16.msra.mxu0 %v6280_v24  ;;  %1947 = vmatpush1.bf16.msra.mxu1 %v6283_v25  ;;  %v6370_v24 = vld [vmem:[#allocation5 + $0x640] ss:$16 sps:$4 sm:$0xff]   ;;  %v6373_v25 = vld [vmem:[#allocation5 + $0x648] ss:$16 sps:$4 sm:$0xff]  }
  0xfc   :  { %1784 = vmatprep.subr.bf16.mxu0 %v6288_v26  ;;  %1948 = vmatprep.subr.bf16.mxu1 %v6291_v27  ;;  %v6378_v26 = vld [vmem:[#allocation5 + $0x664] ss:$16 sps:$4 sm:$0xff]   ;;  %v6381_v27 = vld [vmem:[#allocation5 + $0x66c] ss:$16 sps:$4 sm:$0xff]  }
  0xff   :  { %1785 = vmatpush1.bf16.msra.mxu0 %v6286_v28  ;;  %1949 = vmatpush1.bf16.msra.mxu1 %v6289_v29  ;;  %v6376_v28 = vld [vmem:[#allocation5 + $0x660] ss:$16 sps:$4 sm:$0xff]   ;;  %v6379_v29 = vld [vmem:[#allocation5 + $0x668] ss:$16 sps:$4 sm:$0xff]  }
 0x100   :  { %1786 = vmatprep.subr.bf16.mxu0 %v6294_v30  ;;  %1950 = vmatprep.subr.bf16.mxu1 %v6297_v31  ;;  %v6384_v30 = vld [vmem:[#allocation5 + $0x684] ss:$16 sps:$4 sm:$0xff]   ;;  %v6387_v31 = vld [vmem:[#allocation5 + $0x68c] ss:$16 sps:$4 sm:$0xff]  }
 0x103   :  { %1787 = vmatpush1.bf16.msra.mxu0 %v6292_v32  ;;  %1951 = vmatpush1.bf16.msra.mxu1 %v6295_v33  ;;  %v6382_v32 = vld [vmem:[#allocation5 + $0x680] ss:$16 sps:$4 sm:$0xff]   ;;  %v6385_v33 = vld [vmem:[#allocation5 + $0x688] ss:$16 sps:$4 sm:$0xff]  }
 0x104   :  { %1788 = vmatprep.subr.bf16.mxu0 %v6300_v34  ;;  %1952 = vmatprep.subr.bf16.mxu1 %v6303_v35  ;;  %v6390_v34 = vld [vmem:[#allocation5 + $0x6a4] ss:$16 sps:$4 sm:$0xff]   ;;  %v6393_v35 = vld [vmem:[#allocation5 + $0x6ac] ss:$16 sps:$4 sm:$0xff]  }
 0x107   :  { %1789 = vmatpush1.bf16.msra.mxu0 %v6298_v36  ;;  %1953 = vmatpush1.bf16.msra.mxu1 %v6301_v37  ;;  %v6388_v36 = vld [vmem:[#allocation5 + $0x6a0] ss:$16 sps:$4 sm:$0xff]   ;;  %v6391_v37 = vld [vmem:[#allocation5 + $0x6a8] ss:$16 sps:$4 sm:$0xff]  }
 0x108   :  { %1790 = vmatprep.subr.bf16.mxu0 %v6306_v38  ;;  %1954 = vmatprep.subr.bf16.mxu1 %v6309_v39  ;;  %v6396_v38 = vld [vmem:[#allocation5 + $0x6c4] ss:$16 sps:$4 sm:$0xff]   ;;  %v6399_v39 = vld [vmem:[#allocation5 + $0x6cc] ss:$16 sps:$4 sm:$0xff]  }
 0x10b   :  { %1791 = vmatpush1.bf16.msra.mxu0 %v6304_v40  ;;  %1955 = vmatpush1.bf16.msra.mxu1 %v6307_v41  ;;  %v6394_v40 = vld [vmem:[#allocation5 + $0x6c0] ss:$16 sps:$4 sm:$0xff]   ;;  %v6397_v41 = vld [vmem:[#allocation5 + $0x6c8] ss:$16 sps:$4 sm:$0xff]  }
 0x10c   :  { %1792 = vmatprep.subr.bf16.mxu0 %v6312_v42  ;;  %1956 = vmatprep.subr.bf16.mxu1 %v6315_v43  ;;  %v6402_v42 = vld [vmem:[#allocation5 + $0x6e4] ss:$16 sps:$4 sm:$0xff]   ;;  %v6405_v43 = vld [vmem:[#allocation5 + $0x6ec] ss:$16 sps:$4 sm:$0xff]  }
 0x10f   :  { %1793 = vmatpush1.bf16.msra.mxu0 %v6310_v44  ;;  %1957 = vmatpush1.bf16.msra.mxu1 %v6313_v45  ;;  %v6400_v44 = vld [vmem:[#allocation5 + $0x6e0] ss:$16 sps:$4 sm:$0xff]   ;;  %v6403_v45 = vld [vmem:[#allocation5 + $0x6e8] ss:$16 sps:$4 sm:$0xff]  }
 0x110   :  { %1794 = vmatprep.subr.bf16.mxu0 %v6318_v46  ;;  %1958 = vmatprep.subr.bf16.mxu1 %v6321_v47  ;;  %v6408_v46 = vld [vmem:[#allocation5 + $0x704] ss:$16 sps:$4 sm:$0xff]   ;;  %v6411_v47 = vld [vmem:[#allocation5 + $0x70c] ss:$16 sps:$4 sm:$0xff]  }
 0x113   :  { %1795 = vmatpush1.bf16.msra.mxu0 %v6316_v48  ;;  %1959 = vmatpush1.bf16.msra.mxu1 %v6319_v49  ;;  %v6406_v48 = vld [vmem:[#allocation5 + $0x700] ss:$16 sps:$4 sm:$0xff]   ;;  %v6409_v49 = vld [vmem:[#allocation5 + $0x708] ss:$16 sps:$4 sm:$0xff]  }
 0x114   :  { %1796 = vmatprep.subr.bf16.mxu0 %v6324_v50  ;;  %1960 = vmatprep.subr.bf16.mxu1 %v6327_v51  ;;  %v6414_v50 = vld [vmem:[#allocation5 + $0x724] ss:$16 sps:$4 sm:$0xff]   ;;  %v6417_v51 = vld [vmem:[#allocation5 + $0x72c] ss:$16 sps:$4 sm:$0xff]  }
 0x117   :  { %1797 = vmatpush1.bf16.msra.mxu0 %v6322_v52  ;;  %1961 = vmatpush1.bf16.msra.mxu1 %v6325_v53  ;;  %v6412_v52 = vld [vmem:[#allocation5 + $0x720] ss:$16 sps:$4 sm:$0xff]   ;;  %v6415_v53 = vld [vmem:[#allocation5 + $0x728] ss:$16 sps:$4 sm:$0xff]  }
 0x118   :  { %1798 = vmatprep.subr.bf16.mxu0 %v6330_v54  ;;  %1962 = vmatprep.subr.bf16.mxu1 %v6333_v55  ;;  %v6420_v54 = vld [vmem:[#allocation5 + $0x744] ss:$16 sps:$4 sm:$0xff]   ;;  %v6423_v55 = vld [vmem:[#allocation5 + $0x74c] ss:$16 sps:$4 sm:$0xff]  }
 0x11b   :  { %1799 = vmatpush1.bf16.msra.mxu0 %v6328_v56  ;;  %1963 = vmatpush1.bf16.msra.mxu1 %v6331_v57  ;;  %v6418_v56 = vld [vmem:[#allocation5 + $0x740] ss:$16 sps:$4 sm:$0xff]   ;;  %v6421_v57 = vld [vmem:[#allocation5 + $0x748] ss:$16 sps:$4 sm:$0xff]  }
 0x11c   :  { %1800 = vmatprep.subr.bf16.mxu0 %v6336_v58  ;;  %1964 = vmatprep.subr.bf16.mxu1 %v6339_v59  ;;  %v6426_v58 = vld [vmem:[#allocation5 + $0x764] ss:$16 sps:$4 sm:$0xff]   ;;  %v6429_v59 = vld [vmem:[#allocation5 + $0x76c] ss:$16 sps:$4 sm:$0xff]  }
 0x11f   :  { %1801 = vmatpush1.bf16.msra.mxu0 %v6334_v60  ;;  %1965 = vmatpush1.bf16.msra.mxu1 %v6337_v61  ;;  %v6424_v60 = vld [vmem:[#allocation5 + $0x760] ss:$16 sps:$4 sm:$0xff]   ;;  %v6427_v61 = vld [vmem:[#allocation5 + $0x768] ss:$16 sps:$4 sm:$0xff]  }
 0x120   :  { %1802 = vmatprep.subr.bf16.mxu0 %v6342_v62  ;;  %1966 = vmatprep.subr.bf16.mxu1 %v6345_v63  ;;  %v6432_v62 = vld [vmem:[#allocation5 + $0x784] ss:$16 sps:$4 sm:$0xff]   ;;  %v6435_v63 = vld [vmem:[#allocation5 + $0x78c] ss:$16 sps:$4 sm:$0xff]  }
 0x123   :  { %1803 = vmatpush1.bf16.msra.mxu0 %v6340_v0  ;;  %1967 = vmatpush1.bf16.msra.mxu1 %v6343_v1  ;;  %v6430_v0 = vld [vmem:[#allocation5 + $0x780] ss:$16 sps:$4 sm:$0xff]   ;;  %v6433_v1 = vld [vmem:[#allocation5 + $0x788] ss:$16 sps:$4 sm:$0xff]  }
 0x124   :  { %1804 = vmatprep.subr.bf16.mxu0 %v6348_v2  ;;  %1968 = vmatprep.subr.bf16.mxu1 %v6351_v3  ;;  %v6438_v2 = vld [vmem:[#allocation5 + $0x7a4] ss:$16 sps:$4 sm:$0xff]   ;;  %v6441_v3 = vld [vmem:[#allocation5 + $0x7ac] ss:$16 sps:$4 sm:$0xff]  }
 0x127   :  { %1805 = vmatpush1.bf16.msra.mxu0 %v6346_v4  ;;  %1969 = vmatpush1.bf16.msra.mxu1 %v6349_v5  ;;  %v6436_v4 = vld [vmem:[#allocation5 + $0x7a0] ss:$16 sps:$4 sm:$0xff]   ;;  %v6439_v5 = vld [vmem:[#allocation5 + $0x7a8] ss:$16 sps:$4 sm:$0xff]  }
 0x128   :  { %1806 = vmatprep.subr.bf16.mxu0 %v6354_v6  ;;  %1970 = vmatprep.subr.bf16.mxu1 %v6357_v7  ;;  %v6444_v6 = vld [vmem:[#allocation5 + $0x7c4] ss:$16 sps:$4 sm:$0xff]   ;;  %v6447_v7 = vld [vmem:[#allocation5 + $0x7cc] ss:$16 sps:$4 sm:$0xff]  }
 0x12b   :  { %1807 = vmatpush1.bf16.msra.mxu0 %v6352_v8  ;;  %1971 = vmatpush1.bf16.msra.mxu1 %v6355_v9  ;;  %v6442_v8 = vld [vmem:[#allocation5 + $0x7c0] ss:$16 sps:$4 sm:$0xff]   ;;  %v6445_v9 = vld [vmem:[#allocation5 + $0x7c8] ss:$16 sps:$4 sm:$0xff]  }
 0x12c   :  { %1817 = vmatprep.subr.bf16.mxu0 %v6360_v10  ;;  %1981 = vmatprep.subr.bf16.mxu1 %v6363_v12  ;;  %v6450_v10 = vld [vmem:[#allocation5 + $0x7e4] ss:$16 sps:$4 sm:$0xff]   ;;  %v6448_v12 = vld [vmem:[#allocation5 + $0x7e0] ss:$16 sps:$4 sm:$0xff]  }
 0x12e   :  { %1809 = vmatmul.mubr.bf16.vlgmr.msra.gmra.mrb[0].mxu0 %v132_v15  ;;  %1973 = vmatmul.mubr.bf16.vlgmr.msra.gmra.mrb[0].mxu1 %v132_v15  ;;  %v6456_v15 = vld [vmem:[#allocation7 + $0x4] ss:$16 sps:$4 sm:$0xff]  }
 0x12f   :  { %1818 = vmatpush1.bf16.msra.mxu0 %v6358_v13  ;;  %1982 = vmatpush1.bf16.msra.mxu1 %v6361_v14  ;;  %v6451_v13 = vld [vmem:[#allocation5 + $0x7e8] ss:$16 sps:$4 sm:$0xff]   ;;  %v126_v14 = vld [vmem:[#allocation2 + $0x30] sm:$0xff] }
 0x130   :  { %1819 = vmatprep.subr.bf16.mxu0 %v6366_v17  ;;  %1983 = vmatprep.subr.bf16.mxu1 %v6369_v18  ;;  %v6454_v17 = vld [vmem:[#allocation7] ss:$16 sps:$4 sm:$0xff]   ;;  %v6457_v18 = vld [vmem:[#allocation7 + $0x8] ss:$16 sps:$4 sm:$0xff]  }
 0x131   :  { %1849 = vmatprep.mubr.bf16.mxu0 %v135_v19  ;;  %2013 = vmatprep.mubr.bf16.mxu1 %v135_v19  ;;  %v134_v19 = vpack.c.bf16 %v126_v14, %v126_v14  ;;  %v6544_v14 = vld [vmem:[#allocation7 + $0x1e0] ss:$16 sps:$4 sm:$0xff]  }
 0x133   :  { %1820 = vmatpush1.bf16.msra.mxu0 %v6364_v20  ;;  %1984 = vmatpush1.bf16.msra.mxu1 %v6367_v21  ;;  %v6462_v20 = vld [vmem:[#allocation7 + $0x24] ss:$16 sps:$4 sm:$0xff]   ;;  %v6465_v21 = vld [vmem:[#allocation7 + $0x2c] ss:$16 sps:$4 sm:$0xff]  }
 0x134   :  { %1821 = vmatprep.subr.bf16.mxu0 %v6372_v22  ;;  %1985 = vmatprep.subr.bf16.mxu1 %v6375_v23  ;;  %v6460_v22 = vld [vmem:[#allocation7 + $0x20] ss:$16 sps:$4 sm:$0xff]   ;;  %v6463_v23 = vld [vmem:[#allocation7 + $0x28] ss:$16 sps:$4 sm:$0xff]  }
 0x137   :  { %1822 = vmatpush1.bf16.msra.mxu0 %v6370_v24  ;;  %1986 = vmatpush1.bf16.msra.mxu1 %v6373_v25  ;;  %v6468_v24 = vld [vmem:[#allocation7 + $0x44] ss:$16 sps:$4 sm:$0xff]   ;;  %v6471_v25 = vld [vmem:[#allocation7 + $0x4c] ss:$16 sps:$4 sm:$0xff]  }
 0x138   :  { %1823 = vmatprep.subr.bf16.mxu0 %v6378_v26  ;;  %1987 = vmatprep.subr.bf16.mxu1 %v6381_v27  ;;  %v6466_v26 = vld [vmem:[#allocation7 + $0x40] ss:$16 sps:$4 sm:$0xff]   ;;  %v6469_v27 = vld [vmem:[#allocation7 + $0x48] ss:$16 sps:$4 sm:$0xff]  }
 0x13b   :  { %1824 = vmatpush1.bf16.msra.mxu0 %v6376_v28  ;;  %1988 = vmatpush1.bf16.msra.mxu1 %v6379_v29  ;;  %v6474_v28 = vld [vmem:[#allocation7 + $0x64] ss:$16 sps:$4 sm:$0xff]   ;;  %v6477_v29 = vld [vmem:[#allocation7 + $0x6c] ss:$16 sps:$4 sm:$0xff]  }
 0x13c   :  { %1825 = vmatprep.subr.bf16.mxu0 %v6384_v30  ;;  %1989 = vmatprep.subr.bf16.mxu1 %v6387_v31  ;;  %v6472_v30 = vld [vmem:[#allocation7 + $0x60] ss:$16 sps:$4 sm:$0xff]   ;;  %v6475_v31 = vld [vmem:[#allocation7 + $0x68] ss:$16 sps:$4 sm:$0xff]  }
 0x13f   :  { %1826 = vmatpush1.bf16.msra.mxu0 %v6382_v32  ;;  %1990 = vmatpush1.bf16.msra.mxu1 %v6385_v33  ;;  %v6480_v32 = vld [vmem:[#allocation7 + $0x84] ss:$16 sps:$4 sm:$0xff]   ;;  %v6483_v33 = vld [vmem:[#allocation7 + $0x8c] ss:$16 sps:$4 sm:$0xff]  }
 0x140   :  { %1827 = vmatprep.subr.bf16.mxu0 %v6390_v34  ;;  %1991 = vmatprep.subr.bf16.mxu1 %v6393_v35  ;;  %v6478_v34 = vld [vmem:[#allocation7 + $0x80] ss:$16 sps:$4 sm:$0xff]   ;;  %v6481_v35 = vld [vmem:[#allocation7 + $0x88] ss:$16 sps:$4 sm:$0xff]  }
 0x143   :  { %1828 = vmatpush1.bf16.msra.mxu0 %v6388_v36  ;;  %1992 = vmatpush1.bf16.msra.mxu1 %v6391_v37  ;;  %v6486_v36 = vld [vmem:[#allocation7 + $0xa4] ss:$16 sps:$4 sm:$0xff]   ;;  %v6489_v37 = vld [vmem:[#allocation7 + $0xac] ss:$16 sps:$4 sm:$0xff]  }
 0x144   :  { %1829 = vmatprep.subr.bf16.mxu0 %v6396_v38  ;;  %1993 = vmatprep.subr.bf16.mxu1 %v6399_v39  ;;  %v6484_v38 = vld [vmem:[#allocation7 + $0xa0] ss:$16 sps:$4 sm:$0xff]   ;;  %v6487_v39 = vld [vmem:[#allocation7 + $0xa8] ss:$16 sps:$4 sm:$0xff]  }
 0x147   :  { %1830 = vmatpush1.bf16.msra.mxu0 %v6394_v40  ;;  %1994 = vmatpush1.bf16.msra.mxu1 %v6397_v41  ;;  %v6492_v40 = vld [vmem:[#allocation7 + $0xc4] ss:$16 sps:$4 sm:$0xff]   ;;  %v6495_v41 = vld [vmem:[#allocation7 + $0xcc] ss:$16 sps:$4 sm:$0xff]  }
 0x148   :  { %1831 = vmatprep.subr.bf16.mxu0 %v6402_v42  ;;  %1995 = vmatprep.subr.bf16.mxu1 %v6405_v43  ;;  %v6490_v42 = vld [vmem:[#allocation7 + $0xc0] ss:$16 sps:$4 sm:$0xff]   ;;  %v6493_v43 = vld [vmem:[#allocation7 + $0xc8] ss:$16 sps:$4 sm:$0xff]  }
 0x14b   :  { %1832 = vmatpush1.bf16.msra.mxu0 %v6400_v44  ;;  %1996 = vmatpush1.bf16.msra.mxu1 %v6403_v45  ;;  %v6498_v44 = vld [vmem:[#allocation7 + $0xe4] ss:$16 sps:$4 sm:$0xff]   ;;  %v6501_v45 = vld [vmem:[#allocation7 + $0xec] ss:$16 sps:$4 sm:$0xff]  }
 0x14c   :  { %1833 = vmatprep.subr.bf16.mxu0 %v6408_v46  ;;  %1997 = vmatprep.subr.bf16.mxu1 %v6411_v47  ;;  %v6496_v46 = vld [vmem:[#allocation7 + $0xe0] ss:$16 sps:$4 sm:$0xff]   ;;  %v6499_v47 = vld [vmem:[#allocation7 + $0xe8] ss:$16 sps:$4 sm:$0xff]  }
 0x14f   :  { %1834 = vmatpush1.bf16.msra.mxu0 %v6406_v48  ;;  %1998 = vmatpush1.bf16.msra.mxu1 %v6409_v49  ;;  %v6504_v48 = vld [vmem:[#allocation7 + $0x104] ss:$16 sps:$4 sm:$0xff]   ;;  %v6507_v49 = vld [vmem:[#allocation7 + $0x10c] ss:$16 sps:$4 sm:$0xff]  }
 0x150   :  { %1835 = vmatprep.subr.bf16.mxu0 %v6414_v50  ;;  %1999 = vmatprep.subr.bf16.mxu1 %v6417_v51  ;;  %v6502_v50 = vld [vmem:[#allocation7 + $0x100] ss:$16 sps:$4 sm:$0xff]   ;;  %v6505_v51 = vld [vmem:[#allocation7 + $0x108] ss:$16 sps:$4 sm:$0xff]  }
 0x153   :  { %1836 = vmatpush1.bf16.msra.mxu0 %v6412_v52  ;;  %2000 = vmatpush1.bf16.msra.mxu1 %v6415_v53  ;;  %v6510_v52 = vld [vmem:[#allocation7 + $0x124] ss:$16 sps:$4 sm:$0xff]   ;;  %v6513_v53 = vld [vmem:[#allocation7 + $0x12c] ss:$16 sps:$4 sm:$0xff]  }
 0x154   :  { %1837 = vmatprep.subr.bf16.mxu0 %v6420_v54  ;;  %2001 = vmatprep.subr.bf16.mxu1 %v6423_v55  ;;  %v6508_v54 = vld [vmem:[#allocation7 + $0x120] ss:$16 sps:$4 sm:$0xff]   ;;  %v6511_v55 = vld [vmem:[#allocation7 + $0x128] ss:$16 sps:$4 sm:$0xff]  }
 0x157   :  { %1838 = vmatpush1.bf16.msra.mxu0 %v6418_v56  ;;  %2002 = vmatpush1.bf16.msra.mxu1 %v6421_v57  ;;  %v6516_v56 = vld [vmem:[#allocation7 + $0x144] ss:$16 sps:$4 sm:$0xff]   ;;  %v6519_v57 = vld [vmem:[#allocation7 + $0x14c] ss:$16 sps:$4 sm:$0xff]  }
 0x158   :  { %1839 = vmatprep.subr.bf16.mxu0 %v6426_v58  ;;  %2003 = vmatprep.subr.bf16.mxu1 %v6429_v59  ;;  %v6514_v58 = vld [vmem:[#allocation7 + $0x140] ss:$16 sps:$4 sm:$0xff]   ;;  %v6517_v59 = vld [vmem:[#allocation7 + $0x148] ss:$16 sps:$4 sm:$0xff]  }
 0x15b   :  { %1840 = vmatpush1.bf16.msra.mxu0 %v6424_v60  ;;  %2004 = vmatpush1.bf16.msra.mxu1 %v6427_v61  ;;  %v6522_v60 = vld [vmem:[#allocation7 + $0x164] ss:$16 sps:$4 sm:$0xff]   ;;  %v6525_v61 = vld [vmem:[#allocation7 + $0x16c] ss:$16 sps:$4 sm:$0xff]  }
 0x15c   :  { %1841 = vmatprep.subr.bf16.mxu0 %v6432_v62  ;;  %2005 = vmatprep.subr.bf16.mxu1 %v6435_v63  ;;  %v6520_v62 = vld [vmem:[#allocation7 + $0x160] ss:$16 sps:$4 sm:$0xff]   ;;  %v6523_v63 = vld [vmem:[#allocation7 + $0x168] ss:$16 sps:$4 sm:$0xff]  }
 0x15f   :  { %1842 = vmatpush1.bf16.msra.mxu0 %v6430_v0  ;;  %2006 = vmatpush1.bf16.msra.mxu1 %v6433_v1  ;;  %v6528_v0 = vld [vmem:[#allocation7 + $0x184] ss:$16 sps:$4 sm:$0xff]   ;;  %v6531_v1 = vld [vmem:[#allocation7 + $0x18c] ss:$16 sps:$4 sm:$0xff]  }
 0x160   :  { %1843 = vmatprep.subr.bf16.mxu0 %v6438_v2  ;;  %2007 = vmatprep.subr.bf16.mxu1 %v6441_v3  ;;  %v6526_v2 = vld [vmem:[#allocation7 + $0x180] ss:$16 sps:$4 sm:$0xff]   ;;  %v6529_v3 = vld [vmem:[#allocation7 + $0x188] ss:$16 sps:$4 sm:$0xff]  }
 0x163   :  { %1844 = vmatpush1.bf16.msra.mxu0 %v6436_v4  ;;  %2008 = vmatpush1.bf16.msra.mxu1 %v6439_v5  ;;  %v6534_v4 = vld [vmem:[#allocation7 + $0x1a4] ss:$16 sps:$4 sm:$0xff]   ;;  %v6537_v5 = vld [vmem:[#allocation7 + $0x1ac] ss:$16 sps:$4 sm:$0xff]  }
 0x164   :  { %1845 = vmatprep.subr.bf16.mxu0 %v6444_v6  ;;  %2009 = vmatprep.subr.bf16.mxu1 %v6447_v7  ;;  %v6532_v6 = vld [vmem:[#allocation7 + $0x1a0] ss:$16 sps:$4 sm:$0xff]   ;;  %v6535_v7 = vld [vmem:[#allocation7 + $0x1a8] ss:$16 sps:$4 sm:$0xff]  }
 0x167   :  { %1846 = vmatpush1.bf16.msra.mxu0 %v6442_v8  ;;  %2010 = vmatpush1.bf16.msra.mxu1 %v6445_v9  ;;  %v6540_v8 = vld [vmem:[#allocation7 + $0x1c4] ss:$16 sps:$4 sm:$0xff]   ;;  %v6543_v9 = vld [vmem:[#allocation7 + $0x1cc] ss:$16 sps:$4 sm:$0xff]  }
 0x168   :  { %1847 = vmatprep.subr.bf16.mxu0 %v6450_v10  ;;  %2011 = vmatprep.subr.bf16.mxu1 %v6453_v11  ;;  %v6538_v10 = vld [vmem:[#allocation7 + $0x1c0] ss:$16 sps:$4 sm:$0xff]   ;;  %v6541_v11 = vld [vmem:[#allocation7 + $0x1c8] ss:$16 sps:$4 sm:$0xff]  }
 0x16b   :  { %1848 = vmatpush1.bf16.msra.mxu0 %v6448_v12  ;;  %2012 = vmatpush1.bf16.msra.mxu1 %v6451_v13  ;;  %v6546_v12 = vld [vmem:[#allocation7 + $0x1e4] ss:$16 sps:$4 sm:$0xff]   ;;  %v6549_v13 = vld [vmem:[#allocation7 + $0x1ec] ss:$16 sps:$4 sm:$0xff]  }
 0x16c   :  { %2820 = vmatprep.subr.bf16.mxu0 %v6456_v15  ;;  %2902 = vmatprep.subr.bf16.mxu1 %v6459_v16  ;;  %v6547_v15 = vld [vmem:[#allocation7 + $0x1e8] ss:$16 sps:$4 sm:$0xff]   ;;  %v6552_v16 = vld [vmem:[#allocation7 + $0x204] ss:$16 sps:$4 sm:$0xff]  }
 0x16e   :  { %1850 = vmatmul.mubr.bf16.vlgmr.msra.gmra.mrb[0].mxu0 %v134_v19  ;;  %2014 = vmatmul.mubr.bf16.vlgmr.msra.gmra.mrb[0].mxu1 %v134_v19 }
 0x16f   :  { %2821 = vmatpush1.bf16.msra.mxu0 %v6454_v17  ;;  %2903 = vmatpush1.bf16.msra.mxu1 %v6457_v18  ;;  %v6555_v17 = vld [vmem:[#allocation7 + $0x20c] ss:$16 sps:$4 sm:$0xff]   ;;  %v394_v18 = vlaneseq }
 0x170   :  { %2822 = vmatprep.subr.bf16.mxu0 %v6462_v20  ;;  %2904 = vmatprep.subr.bf16.mxu1 %v6465_v21  ;;  %v7389_v21 = vld [vmem:[%s7467_s2] sm:$0xf] }
 0x171   :  { %v7381_v19 = vshrl.u32 %v394_v18, 7  ;;  %v6612_v18 = vld [vmem:[#allocation7 + $0x344] ss:$16 sps:$4 sm:$0xff]  }
 0x173   :  { %2823 = vmatpush1.bf16.msra.mxu0 %v6460_v22  ;;  %2905 = vmatpush1.bf16.msra.mxu1 %v6463_v23  ;;  %v7384_v20 = vsub.s32 0, %v7381_v19  ;;  %v7392_v22 = vsub.s32 1, %v7381_v19  ;;  %v7395_v23 = vsub.s32 3, %v7381_v19 }
 0x174   :  { %2824 = vmatprep.subr.bf16.mxu0 %v6468_v24  ;;  %2906 = vmatprep.subr.bf16.mxu1 %v6471_v25 }
 0x175   :  { %v397_v24 = vrot.slane %v7389_v21, %v7384_v20  ;;  %v401_v25 = vrot.slane %v7389_v21, %v7392_v22 }
 0x177   :  { %2825 = vmatpush1.bf16.msra.mxu0 %v6466_v26  ;;  %2907 = vmatpush1.bf16.msra.mxu1 %v6469_v27  ;;  %v409_v26 = vrot.slane %v7389_v21, %v7395_v23 }
 0x178   :  { %2826 = vmatprep.subr.bf16.mxu0 %v6474_v28  ;;  %2908 = vmatprep.subr.bf16.mxu1 %v6477_v29 }
 0x17b   :  { %2827 = vmatpush1.bf16.msra.mxu0 %v6472_v30  ;;  %2909 = vmatpush1.bf16.msra.mxu1 %v6475_v31 }
 0x17c   :  { %2828 = vmatprep.subr.bf16.mxu0 %v6480_v32  ;;  %2910 = vmatprep.subr.bf16.mxu1 %v6483_v33 }
 0x17f   :  { %2829 = vmatpush1.bf16.msra.mxu0 %v6478_v34  ;;  %2911 = vmatpush1.bf16.msra.mxu1 %v6481_v35 }
 0x180   :  { %2830 = vmatprep.subr.bf16.mxu0 %v6486_v36  ;;  %2912 = vmatprep.subr.bf16.mxu1 %v6489_v37 }
 0x183   :  { %2831 = vmatpush1.bf16.msra.mxu0 %v6484_v38  ;;  %2913 = vmatpush1.bf16.msra.mxu1 %v6487_v39 }
 0x184   :  { %2832 = vmatprep.subr.bf16.mxu0 %v6492_v40  ;;  %2914 = vmatprep.subr.bf16.mxu1 %v6495_v41 }
 0x187   :  { %2833 = vmatpush1.bf16.msra.mxu0 %v6490_v42  ;;  %2915 = vmatpush1.bf16.msra.mxu1 %v6493_v43  ;;  %v6550_v42 = vld [vmem:[#allocation7 + $0x200] ss:$16 sps:$4 sm:$0xff]   ;;  %v6553_v43 = vld [vmem:[#allocation7 + $0x208] ss:$16 sps:$4 sm:$0xff]  }
 0x188   :  { %2834 = vmatprep.subr.bf16.mxu0 %v6498_v44  ;;  %2916 = vmatprep.subr.bf16.mxu1 %v6501_v45  ;;  %v6558_v45 = vld [vmem:[#allocation7 + $0x224] ss:$16 sps:$4 sm:$0xff]  }
 0x18b   :  { %2835 = vmatpush1.bf16.msra.mxu0 %v6496_v46  ;;  %2917 = vmatpush1.bf16.msra.mxu1 %v6499_v47  ;;  %v6561_v46 = vld [vmem:[#allocation7 + $0x22c] ss:$16 sps:$4 sm:$0xff]  }
 0x18c   :  { %2836 = vmatprep.subr.bf16.mxu0 %v6504_v48  ;;  %2918 = vmatprep.subr.bf16.mxu1 %v6507_v49  ;;  %v6556_v48 = vld [vmem:[#allocation7 + $0x220] ss:$16 sps:$4 sm:$0xff]   ;;  %v6559_v49 = vld [vmem:[#allocation7 + $0x228] ss:$16 sps:$4 sm:$0xff]  }
 0x18f   :  { %2837 = vmatpush1.bf16.msra.mxu0 %v6502_v50  ;;  %2919 = vmatpush1.bf16.msra.mxu1 %v6505_v51  ;;  %v6564_v50 = vld [vmem:[#allocation7 + $0x244] ss:$16 sps:$4 sm:$0xff]   ;;  %v6567_v51 = vld [vmem:[#allocation7 + $0x24c] ss:$16 sps:$4 sm:$0xff]  }
 0x190   :  { %2838 = vmatprep.subr.bf16.mxu0 %v6510_v52  ;;  %2920 = vmatprep.subr.bf16.mxu1 %v6513_v53  ;;  %v6562_v52 = vld [vmem:[#allocation7 + $0x240] ss:$16 sps:$4 sm:$0xff]   ;;  %v6565_v53 = vld [vmem:[#allocation7 + $0x248] ss:$16 sps:$4 sm:$0xff]  }
 0x193   :  { %2839 = vmatpush1.bf16.msra.mxu0 %v6508_v54  ;;  %2921 = vmatpush1.bf16.msra.mxu1 %v6511_v55  ;;  %v6570_v54 = vld [vmem:[#allocation7 + $0x264] ss:$16 sps:$4 sm:$0xff]   ;;  %v6573_v55 = vld [vmem:[#allocation7 + $0x26c] ss:$16 sps:$4 sm:$0xff]  }
 0x194   :  { %2840 = vmatprep.subr.bf16.mxu0 %v6516_v56  ;;  %2922 = vmatprep.subr.bf16.mxu1 %v6519_v57  ;;  %v6568_v56 = vld [vmem:[#allocation7 + $0x260] ss:$16 sps:$4 sm:$0xff]   ;;  %v6571_v57 = vld [vmem:[#allocation7 + $0x268] ss:$16 sps:$4 sm:$0xff]  }
 0x197   :  { %2841 = vmatpush1.bf16.msra.mxu0 %v6514_v58  ;;  %2923 = vmatpush1.bf16.msra.mxu1 %v6517_v59  ;;  %v6576_v58 = vld [vmem:[#allocation7 + $0x284] ss:$16 sps:$4 sm:$0xff]   ;;  %v6579_v59 = vld [vmem:[#allocation7 + $0x28c] ss:$16 sps:$4 sm:$0xff]  }
 0x198   :  { %2842 = vmatprep.subr.bf16.mxu0 %v6522_v60  ;;  %2924 = vmatprep.subr.bf16.mxu1 %v6525_v61  ;;  %v6574_v60 = vld [vmem:[#allocation7 + $0x280] ss:$16 sps:$4 sm:$0xff]   ;;  %v6577_v61 = vld [vmem:[#allocation7 + $0x288] ss:$16 sps:$4 sm:$0xff]  }
 0x19b   :  { %2843 = vmatpush1.bf16.msra.mxu0 %v6520_v62  ;;  %2925 = vmatpush1.bf16.msra.mxu1 %v6523_v63  ;;  %v6582_v62 = vld [vmem:[#allocation7 + $0x2a4] ss:$16 sps:$4 sm:$0xff]   ;;  %v6585_v63 = vld [vmem:[#allocation7 + $0x2ac] ss:$16 sps:$4 sm:$0xff]  }
 0x19c   :  { %2844 = vmatprep.subr.bf16.mxu0 %v6528_v0  ;;  %2926 = vmatprep.subr.bf16.mxu1 %v6531_v1  ;;  %v6580_v0 = vld [vmem:[#allocation7 + $0x2a0] ss:$16 sps:$4 sm:$0xff]   ;;  %v6583_v1 = vld [vmem:[#allocation7 + $0x2a8] ss:$16 sps:$4 sm:$0xff]  }
 0x19f   :  { %2845 = vmatpush1.bf16.msra.mxu0 %v6526_v2  ;;  %2927 = vmatpush1.bf16.msra.mxu1 %v6529_v3  ;;  %v6588_v2 = vld [vmem:[#allocation7 + $0x2c4] ss:$16 sps:$4 sm:$0xff]   ;;  %v6591_v3 = vld [vmem:[#allocation7 + $0x2cc] ss:$16 sps:$4 sm:$0xff]  }
 0x1a0   :  { %2846 = vmatprep.subr.bf16.mxu0 %v6534_v4  ;;  %2928 = vmatprep.subr.bf16.mxu1 %v6537_v5  ;;  %v6586_v4 = vld [vmem:[#allocation7 + $0x2c0] ss:$16 sps:$4 sm:$0xff]   ;;  %v6589_v5 = vld [vmem:[#allocation7 + $0x2c8] ss:$16 sps:$4 sm:$0xff]  }
 0x1a3   :  { %2847 = vmatpush1.bf16.msra.mxu0 %v6532_v6  ;;  %2929 = vmatpush1.bf16.msra.mxu1 %v6535_v7  ;;  %v6594_v6 = vld [vmem:[#allocation7 + $0x2e4] ss:$16 sps:$4 sm:$0xff]   ;;  %v6597_v7 = vld [vmem:[#allocation7 + $0x2ec] ss:$16 sps:$4 sm:$0xff]  }
 0x1a4   :  { %2848 = vmatprep.subr.bf16.mxu0 %v6540_v8  ;;  %2930 = vmatprep.subr.bf16.mxu1 %v6543_v9  ;;  %v6592_v8 = vld [vmem:[#allocation7 + $0x2e0] ss:$16 sps:$4 sm:$0xff]   ;;  %v6595_v9 = vld [vmem:[#allocation7 + $0x2e8] ss:$16 sps:$4 sm:$0xff]  }
 0x1a7   :  { %2849 = vmatpush1.bf16.msra.mxu0 %v6538_v10  ;;  %2931 = vmatpush1.bf16.msra.mxu1 %v6541_v11  ;;  %v6600_v10 = vld [vmem:[#allocation7 + $0x304] ss:$16 sps:$4 sm:$0xff]   ;;  %v6603_v11 = vld [vmem:[#allocation7 + $0x30c] ss:$16 sps:$4 sm:$0xff]  }
 0x1a8   :  { %2850 = vmatprep.subr.bf16.mxu0 %v6546_v12  ;;  %2932 = vmatprep.subr.bf16.mxu1 %v6549_v13  ;;  %v6598_v12 = vld [vmem:[#allocation7 + $0x300] ss:$16 sps:$4 sm:$0xff]   ;;  %v6601_v13 = vld [vmem:[#allocation7 + $0x308] ss:$16 sps:$4 sm:$0xff]  }
 0x1ab   :  { %2851 = vmatpush1.bf16.msra.mxu0 %v6544_v14  ;;  %2933 = vmatpush1.bf16.msra.mxu1 %v6547_v15  ;;  %v6606_v14 = vld [vmem:[#allocation7 + $0x324] ss:$16 sps:$4 sm:$0xff]   ;;  %v6609_v15 = vld [vmem:[#allocation7 + $0x32c] ss:$16 sps:$4 sm:$0xff]  }
 0x1ac   :  { %2861 = vmatprep.subr.bf16.mxu0 %v6552_v16  ;;  %2943 = vmatprep.subr.bf16.mxu1 %v6555_v17  ;;  %v6604_v16 = vld [vmem:[#allocation7 + $0x320] ss:$16 sps:$4 sm:$0xff]   ;;  %v6607_v17 = vld [vmem:[#allocation7 + $0x328] ss:$16 sps:$4 sm:$0xff]  }
 0x241   :  { %v1851_v27 = vpop.f32.mrb[0].mxu0  ;;  %v7403_v28 = vpop.f32.mrb[0].mxu1 }
 0x242   :  { %v5995_v29 = vadd.f32 %v1851_v27, %v397_v24  ;;  %v1853_v30 = vpop.f32.mrb[1].mxu0  ;;  %v2017_v31 = vpop.f32.mrb[1].mxu1  ;;  %v6615_v24 = vld [vmem:[#allocation7 + $0x34c] ss:$16 sps:$4 sm:$0xff]   ;;  %v6618_v27 = vld [vmem:[#allocation7 + $0x364] ss:$16 sps:$4 sm:$0xff]  }
 0x243   :  { %v5996_v32 = vadd.f32 %v1853_v30, %v401_v25  ;;  %v5998_v33 = vadd.f32 %v2017_v31, %v409_v26  ;;  %v1855_v34 = vpop.f32.mrb[2].mxu0  ;;  %v2019_v35 = vpop.f32.mrb[2].mxu1  ;;  %v6610_v25 = vld [vmem:[#allocation7 + $0x340] ss:$16 sps:$4 sm:$0xff]   ;;  %v6613_v26 = vld [vmem:[#allocation7 + $0x348] ss:$16 sps:$4 sm:$0xff]  }
 0x244   :  { %v2022_v36 = vmax.f32 %v5995_v29, 0.0  ;;  %v1856_v37 = vpop.f32.mrb[3].mxu0  ;;  %v2020_v38 = vpop.f32.mrb[3].mxu1  ;;  %v6621_v29 = vld [vmem:[#allocation7 + $0x36c] ss:$16 sps:$4 sm:$0xff]  }
 0x245   :  { %v2023_v39 = vmax.f32 %v5996_v32, 0.0  ;;  %v2025_v40 = vmax.f32 %v5998_v33, 0.0  ;;  %v6616_v30 = vld [vmem:[#allocation7 + $0x360] ss:$16 sps:$4 sm:$0xff]   ;;  %v6619_v31 = vld [vmem:[#allocation7 + $0x368] ss:$16 sps:$4 sm:$0xff]  }
 0x246   :  { %v2026_v44 = vpack.c.bf16 %v2022_v36, %v2022_v36  ;;  %v6624_v32 = vld [vmem:[#allocation7 + $0x384] ss:$16 sps:$4 sm:$0xff]   ;;  %v6627_v33 = vld [vmem:[#allocation7 + $0x38c] ss:$16 sps:$4 sm:$0xff]   ;;  %v6622_v34 = vld [vmem:[#allocation7 + $0x380] ss:$16 sps:$4 sm:$0xff]  }
 0x247   :  { %v2027_v41 = vpack.c.bf16 %v2023_v39, %v2023_v39  ;;  %v2029_v47 = vpack.c.bf16 %v2025_v40, %v2025_v40  ;;  %v6625_v35 = vld [vmem:[#allocation7 + $0x388] ss:$16 sps:$4 sm:$0xff]   ;;  %v7406_v36 = vsub.s32 2, %v7381_v19  ;;  %v6630_v37 = vld [vmem:[#allocation7 + $0x3a4] ss:$16 sps:$4 sm:$0xff]  }
 0x248   :  { %v6633_v38 = vld [vmem:[#allocation7 + $0x3ac] ss:$16 sps:$4 sm:$0xff]   ;;  %v6628_v39 = vld [vmem:[#allocation7 + $0x3a0] ss:$16 sps:$4 sm:$0xff]   ;;  %v6631_v40 = vld [vmem:[#allocation7 + $0x3a8] ss:$16 sps:$4 sm:$0xff]  }
 0x249   :  { %2852 = vmatprep.mubr.bf16.mxu0 %v2027_v41  ;;  %2934 = vmatprep.mubr.bf16.mxu1 %v2027_v41  ;;  %v405_v41 = vrot.slane %v7389_v21, %v7406_v36  ;;  %v6637_v19 = vld [vmem:[#allocation7 + $0x3c8] ss:$16 sps:$4 sm:$0xff]   ;;  %v6648_v21 = vld [vmem:[#allocation8 + $0x4] ss:$16 sps:$4 sm:$0xff]  }
 0x24a   :  { %2853 = vmatmul.mubr.bf16.vlgmr.msra.gmra.mrb[4].mxu0 %v2026_v44  ;;  %2935 = vmatmul.mubr.bf16.vlgmr.msra.gmra.mrb[4].mxu1 %v2026_v44  ;;  %v6634_v44 = vld [vmem:[#allocation7 + $0x3c0] ss:$16 sps:$4 sm:$0xff]  }
 0x24b   :  { %2862 = vmatpush1.bf16.msra.mxu0 %v6550_v42  ;;  %2944 = vmatpush1.bf16.msra.mxu1 %v6553_v43  ;;  %v6636_v42 = vld [vmem:[#allocation7 + $0x3c4] ss:$16 sps:$4 sm:$0xff]   ;;  %v6639_v43 = vld [vmem:[#allocation7 + $0x3cc] ss:$16 sps:$4 sm:$0xff]  }
 0x24c   :  { %2893 = vmatprep.mubr.bf16.mxu0 %v2029_v47  ;;  %2975 = vmatprep.mubr.bf16.mxu1 %v2029_v47  ;;  %v6645_v47 = vld [vmem:[#allocation7 + $0x3ec] ss:$16 sps:$4 sm:$0xff]  }
 0x24d   :  { %2863 = vmatprep.subr.bf16.mxu0 %v6558_v45  ;;  %2945 = vmatprep.subr.bf16.mxu1 %v6561_v46  ;;  %v5997_v45 = vadd.f32 %v7403_v28, %v405_v41  ;;  %v6642_v46 = vld [vmem:[#allocation7 + $0x3e4] ss:$16 sps:$4 sm:$0xff]  }
 0x24e   :  { %v6654_v28 = vld [vmem:[#allocation8 + $0x24] ss:$16 sps:$4 sm:$0xff]  }
 0x24f   :  { %2864 = vmatpush1.bf16.msra.mxu0 %v6556_v48  ;;  %2946 = vmatpush1.bf16.msra.mxu1 %v6559_v49  ;;  %v6640_v48 = vld [vmem:[#allocation7 + $0x3e0] ss:$16 sps:$4 sm:$0xff]   ;;  %v6643_v49 = vld [vmem:[#allocation7 + $0x3e8] ss:$16 sps:$4 sm:$0xff]   ;;  %v6720_v41 = vld [vmem:[#allocation8 + $0x184] ss:$16 sps:$4 sm:$0xff]  }
 0x250   :  { %2865 = vmatprep.subr.bf16.mxu0 %v6564_v50  ;;  %2947 = vmatprep.subr.bf16.mxu1 %v6567_v51  ;;  %v2024_v50 = vmax.f32 %v5997_v45, 0.0  ;;  %v6651_v51 = vld [vmem:[#allocation8 + $0xc] ss:$16 sps:$4 sm:$0xff]  }
 0x251   :  { %v6729_v45 = vld [vmem:[#allocation8 + $0x1ac] ss:$16 sps:$4 sm:$0xff]  }
 0x253   :  { %2866 = vmatpush1.bf16.msra.mxu0 %v6562_v52  ;;  %2948 = vmatpush1.bf16.msra.mxu1 %v6565_v53  ;;  %v6646_v52 = vld [vmem:[#allocation8] ss:$16 sps:$4 sm:$0xff]   ;;  %v6649_v53 = vld [vmem:[#allocation8 + $0x8] ss:$16 sps:$4 sm:$0xff]  }
 0x254   :  { %2867 = vmatprep.subr.bf16.mxu0 %v6570_v54  ;;  %2949 = vmatprep.subr.bf16.mxu1 %v6573_v55  ;;  %v2028_v54 = vpack.c.bf16 %v2024_v50, %v2024_v50  ;;  %v6657_v55 = vld [vmem:[#allocation8 + $0x2c] ss:$16 sps:$4 sm:$0xff]   ;;  %v6730_v50 = vld [vmem:[#allocation8 + $0x1c0] ss:$16 sps:$4 sm:$0xff]  }
 0x257   :  { %2868 = vmatpush1.bf16.msra.mxu0 %v6568_v56  ;;  %2950 = vmatpush1.bf16.msra.mxu1 %v6571_v57  ;;  %v6652_v56 = vld [vmem:[#allocation8 + $0x20] ss:$16 sps:$4 sm:$0xff]   ;;  %v6655_v57 = vld [vmem:[#allocation8 + $0x28] ss:$16 sps:$4 sm:$0xff]  }
 0x258   :  { %2869 = vmatprep.subr.bf16.mxu0 %v6576_v58  ;;  %2951 = vmatprep.subr.bf16.mxu1 %v6579_v59  ;;  %v6660_v58 = vld [vmem:[#allocation8 + $0x44] ss:$16 sps:$4 sm:$0xff]   ;;  %v6663_v59 = vld [vmem:[#allocation8 + $0x4c] ss:$16 sps:$4 sm:$0xff]  }
 0x25b   :  { %2870 = vmatpush1.bf16.msra.mxu0 %v6574_v60  ;;  %2952 = vmatpush1.bf16.msra.mxu1 %v6577_v61  ;;  %v6658_v60 = vld [vmem:[#allocation8 + $0x40] ss:$16 sps:$4 sm:$0xff]   ;;  %v6661_v61 = vld [vmem:[#allocation8 + $0x48] ss:$16 sps:$4 sm:$0xff]  }
 0x25c   :  { %2871 = vmatprep.subr.bf16.mxu0 %v6582_v62  ;;  %2953 = vmatprep.subr.bf16.mxu1 %v6585_v63  ;;  %v6666_v62 = vld [vmem:[#allocation8 + $0x64] ss:$16 sps:$4 sm:$0xff]   ;;  %v6669_v63 = vld [vmem:[#allocation8 + $0x6c] ss:$16 sps:$4 sm:$0xff]  }
 0x25f   :  { %2872 = vmatpush1.bf16.msra.mxu0 %v6580_v0  ;;  %2954 = vmatpush1.bf16.msra.mxu1 %v6583_v1  ;;  %v6664_v0 = vld [vmem:[#allocation8 + $0x60] ss:$16 sps:$4 sm:$0xff]   ;;  %v6667_v1 = vld [vmem:[#allocation8 + $0x68] ss:$16 sps:$4 sm:$0xff]  }
 0x260   :  { %2873 = vmatprep.subr.bf16.mxu0 %v6588_v2  ;;  %2955 = vmatprep.subr.bf16.mxu1 %v6591_v3  ;;  %v6672_v2 = vld [vmem:[#allocation8 + $0x84] ss:$16 sps:$4 sm:$0xff]   ;;  %v6675_v3 = vld [vmem:[#allocation8 + $0x8c] ss:$16 sps:$4 sm:$0xff]  }
 0x263   :  { %2874 = vmatpush1.bf16.msra.mxu0 %v6586_v4  ;;  %2956 = vmatpush1.bf16.msra.mxu1 %v6589_v5  ;;  %v6670_v4 = vld [vmem:[#allocation8 + $0x80] ss:$16 sps:$4 sm:$0xff]   ;;  %v6673_v5 = vld [vmem:[#allocation8 + $0x88] ss:$16 sps:$4 sm:$0xff]  }
 0x264   :  { %2875 = vmatprep.subr.bf16.mxu0 %v6594_v6  ;;  %2957 = vmatprep.subr.bf16.mxu1 %v6597_v7  ;;  %v6678_v6 = vld [vmem:[#allocation8 + $0xa4] ss:$16 sps:$4 sm:$0xff]   ;;  %v6681_v7 = vld [vmem:[#allocation8 + $0xac] ss:$16 sps:$4 sm:$0xff]  }
 0x267   :  { %2876 = vmatpush1.bf16.msra.mxu0 %v6592_v8  ;;  %2958 = vmatpush1.bf16.msra.mxu1 %v6595_v9  ;;  %v6676_v8 = vld [vmem:[#allocation8 + $0xa0] ss:$16 sps:$4 sm:$0xff]   ;;  %v6679_v9 = vld [vmem:[#allocation8 + $0xa8] ss:$16 sps:$4 sm:$0xff]  }
 0x268   :  { %2877 = vmatprep.subr.bf16.mxu0 %v6600_v10  ;;  %2959 = vmatprep.subr.bf16.mxu1 %v6603_v11  ;;  %v6684_v10 = vld [vmem:[#allocation8 + $0xc4] ss:$16 sps:$4 sm:$0xff]   ;;  %v6687_v11 = vld [vmem:[#allocation8 + $0xcc] ss:$16 sps:$4 sm:$0xff]  }
 0x26b   :  { %2878 = vmatpush1.bf16.msra.mxu0 %v6598_v12  ;;  %2960 = vmatpush1.bf16.msra.mxu1 %v6601_v13  ;;  %v6682_v12 = vld [vmem:[#allocation8 + $0xc0] ss:$16 sps:$4 sm:$0xff]   ;;  %v6685_v13 = vld [vmem:[#allocation8 + $0xc8] ss:$16 sps:$4 sm:$0xff]  }
 0x26c   :  { %2879 = vmatprep.subr.bf16.mxu0 %v6606_v14  ;;  %2961 = vmatprep.subr.bf16.mxu1 %v6609_v15  ;;  %v6690_v14 = vld [vmem:[#allocation8 + $0xe4] ss:$16 sps:$4 sm:$0xff]   ;;  %v6693_v15 = vld [vmem:[#allocation8 + $0xec] ss:$16 sps:$4 sm:$0xff]  }
 0x26f   :  { %2880 = vmatpush1.bf16.msra.mxu0 %v6604_v16  ;;  %2962 = vmatpush1.bf16.msra.mxu1 %v6607_v17  ;;  %v6688_v16 = vld [vmem:[#allocation8 + $0xe0] ss:$16 sps:$4 sm:$0xff]   ;;  %v6691_v17 = vld [vmem:[#allocation8 + $0xe8] ss:$16 sps:$4 sm:$0xff]  }
 0x270   :  { %2881 = vmatprep.subr.bf16.mxu0 %v6612_v18  ;;  %2963 = vmatprep.subr.bf16.mxu1 %v6615_v24  ;;  %v6696_v18 = vld [vmem:[#allocation8 + $0x104] ss:$16 sps:$4 sm:$0xff]   ;;  %v6699_v24 = vld [vmem:[#allocation8 + $0x10c] ss:$16 sps:$4 sm:$0xff]  }
 0x273   :  { %2882 = vmatpush1.bf16.msra.mxu0 %v6610_v25  ;;  %2964 = vmatpush1.bf16.msra.mxu1 %v6613_v26  ;;  %v6694_v25 = vld [vmem:[#allocation8 + $0x100] ss:$16 sps:$4 sm:$0xff]   ;;  %v6697_v26 = vld [vmem:[#allocation8 + $0x108] ss:$16 sps:$4 sm:$0xff]  }
 0x274   :  { %2883 = vmatprep.subr.bf16.mxu0 %v6618_v27  ;;  %2965 = vmatprep.subr.bf16.mxu1 %v6621_v29  ;;  %v6702_v27 = vld [vmem:[#allocation8 + $0x124] ss:$16 sps:$4 sm:$0xff]   ;;  %v6705_v29 = vld [vmem:[#allocation8 + $0x12c] ss:$16 sps:$4 sm:$0xff]  }
 0x277   :  { %2884 = vmatpush1.bf16.msra.mxu0 %v6616_v30  ;;  %2966 = vmatpush1.bf16.msra.mxu1 %v6619_v31  ;;  %v6700_v30 = vld [vmem:[#allocation8 + $0x120] ss:$16 sps:$4 sm:$0xff]   ;;  %v6703_v31 = vld [vmem:[#allocation8 + $0x128] ss:$16 sps:$4 sm:$0xff]  }
 0x278   :  { %2885 = vmatprep.subr.bf16.mxu0 %v6624_v32  ;;  %2967 = vmatprep.subr.bf16.mxu1 %v6627_v33  ;;  %v6708_v32 = vld [vmem:[#allocation8 + $0x144] ss:$16 sps:$4 sm:$0xff]   ;;  %v6711_v33 = vld [vmem:[#allocation8 + $0x14c] ss:$16 sps:$4 sm:$0xff]  }
 0x27b   :  { %2886 = vmatpush1.bf16.msra.mxu0 %v6622_v34  ;;  %2968 = vmatpush1.bf16.msra.mxu1 %v6625_v35  ;;  %v6706_v34 = vld [vmem:[#allocation8 + $0x140] ss:$16 sps:$4 sm:$0xff]   ;;  %v6709_v35 = vld [vmem:[#allocation8 + $0x148] ss:$16 sps:$4 sm:$0xff]  }
 0x27c   :  { %2887 = vmatprep.subr.bf16.mxu0 %v6630_v37  ;;  %2969 = vmatprep.subr.bf16.mxu1 %v6633_v38  ;;  %v6714_v37 = vld [vmem:[#allocation8 + $0x164] ss:$16 sps:$4 sm:$0xff]   ;;  %v6717_v38 = vld [vmem:[#allocation8 + $0x16c] ss:$16 sps:$4 sm:$0xff]  }
 0x27f   :  { %2888 = vmatpush1.bf16.msra.mxu0 %v6628_v39  ;;  %2970 = vmatpush1.bf16.msra.mxu1 %v6631_v40  ;;  %v6712_v39 = vld [vmem:[#allocation8 + $0x160] ss:$16 sps:$4 sm:$0xff]   ;;  %v6715_v40 = vld [vmem:[#allocation8 + $0x168] ss:$16 sps:$4 sm:$0xff]  }
 0x280   :  { %2889 = vmatprep.subr.bf16.mxu0 %v6636_v42  ;;  %2971 = vmatprep.subr.bf16.mxu1 %v6639_v43  ;;  %v6723_v42 = vld [vmem:[#allocation8 + $0x18c] ss:$16 sps:$4 sm:$0xff]   ;;  %v6718_v43 = vld [vmem:[#allocation8 + $0x180] ss:$16 sps:$4 sm:$0xff]  }
 0x283   :  { %2890 = vmatpush1.bf16.msra.mxu0 %v6634_v44  ;;  %2972 = vmatpush1.bf16.msra.mxu1 %v6637_v19  ;;  %v6721_v44 = vld [vmem:[#allocation8 + $0x188] ss:$16 sps:$4 sm:$0xff]   ;;  %v6726_v19 = vld [vmem:[#allocation8 + $0x1a4] ss:$16 sps:$4 sm:$0xff]  }
 0x284   :  { %2891 = vmatprep.subr.bf16.mxu0 %v6642_v46  ;;  %2973 = vmatprep.subr.bf16.mxu1 %v6645_v47  ;;  %v6724_v46 = vld [vmem:[#allocation8 + $0x1a0] ss:$16 sps:$4 sm:$0xff]   ;;  %v6727_v47 = vld [vmem:[#allocation8 + $0x1a8] ss:$16 sps:$4 sm:$0xff]  }
 0x287   :  { %2892 = vmatpush1.bf16.msra.mxu0 %v6640_v48  ;;  %2974 = vmatpush1.bf16.msra.mxu1 %v6643_v49  ;;  %v6732_v48 = vld [vmem:[#allocation8 + $0x1c4] ss:$16 sps:$4 sm:$0xff]   ;;  %v6735_v49 = vld [vmem:[#allocation8 + $0x1cc] ss:$16 sps:$4 sm:$0xff]  }
 0x288   :  { %3782 = vmatprep.subr.bf16.mxu0 %v6648_v21  ;;  %3864 = vmatprep.subr.bf16.mxu1 %v6651_v51  ;;  %v6733_v21 = vld [vmem:[#allocation8 + $0x1c8] ss:$16 sps:$4 sm:$0xff]   ;;  %v6738_v51 = vld [vmem:[#allocation8 + $0x1e4] ss:$16 sps:$4 sm:$0xff]  }
 0x28a   :  { %2894 = vmatmul.mubr.bf16.vlgmr.msra.gmra.mrb[4].mxu0 %v2028_v54  ;;  %2976 = vmatmul.mubr.bf16.vlgmr.msra.gmra.mrb[4].mxu1 %v2028_v54  ;;  %v6739_v54 = vld [vmem:[#allocation8 + $0x1e8] ss:$16 sps:$4 sm:$0xff]  }
 0x28b   :  { %3783 = vmatpush1.bf16.msra.mxu0 %v6646_v52  ;;  %3865 = vmatpush1.bf16.msra.mxu1 %v6649_v53  ;;  %v6741_v52 = vld [vmem:[#allocation8 + $0x1ec] ss:$16 sps:$4 sm:$0xff]   ;;  %v6736_v53 = vld [vmem:[#allocation8 + $0x1e0] ss:$16 sps:$4 sm:$0xff]  }
 0x28c   :  { %3784 = vmatprep.subr.bf16.mxu0 %v6654_v28  ;;  %3866 = vmatprep.subr.bf16.mxu1 %v6657_v55  ;;  %v6744_v28 = vld [vmem:[#allocation8 + $0x204] ss:$16 sps:$4 sm:$0xff]   ;;  %v6747_v55 = vld [vmem:[#allocation8 + $0x20c] ss:$16 sps:$4 sm:$0xff]  }
 0x28f   :  { %3785 = vmatpush1.bf16.msra.mxu0 %v6652_v56  ;;  %3867 = vmatpush1.bf16.msra.mxu1 %v6655_v57  ;;  %v7414_v56 = vld [vmem:[%s7469_s4] sm:$0xf] }
 0x290   :  { %3786 = vmatprep.subr.bf16.mxu0 %v6660_v58  ;;  %3868 = vmatprep.subr.bf16.mxu1 %v6663_v59  ;;  %v2163_v57 = vrot.slane %v7414_v56, %v7384_v20  ;;  %v2167_v58 = vrot.slane %v7414_v56, %v7392_v22  ;;  %v2175_v59 = vrot.slane %v7414_v56, %v7395_v23 }
 0x293   :  { %3787 = vmatpush1.bf16.msra.mxu0 %v6658_v60  ;;  %3869 = vmatpush1.bf16.msra.mxu1 %v6661_v61 }
 0x294   :  { %3788 = vmatprep.subr.bf16.mxu0 %v6666_v62  ;;  %3870 = vmatprep.subr.bf16.mxu1 %v6669_v63 }
 0x297   :  { %3789 = vmatpush1.bf16.msra.mxu0 %v6664_v0  ;;  %3871 = vmatpush1.bf16.msra.mxu1 %v6667_v1 }
 0x298   :  { %3790 = vmatprep.subr.bf16.mxu0 %v6672_v2  ;;  %3872 = vmatprep.subr.bf16.mxu1 %v6675_v3 }
 0x29b   :  { %3791 = vmatpush1.bf16.msra.mxu0 %v6670_v4  ;;  %3873 = vmatpush1.bf16.msra.mxu1 %v6673_v5 }
 0x29c   :  { %3792 = vmatprep.subr.bf16.mxu0 %v6678_v6  ;;  %3874 = vmatprep.subr.bf16.mxu1 %v6681_v7 }
 0x29f   :  { %3793 = vmatpush1.bf16.msra.mxu0 %v6676_v8  ;;  %3875 = vmatpush1.bf16.msra.mxu1 %v6679_v9 }
 0x2a0   :  { %3794 = vmatprep.subr.bf16.mxu0 %v6684_v10  ;;  %3876 = vmatprep.subr.bf16.mxu1 %v6687_v11  ;;  %v6742_v11 = vld [vmem:[#allocation8 + $0x200] ss:$16 sps:$4 sm:$0xff]  }
 0x2a3   :  { %3795 = vmatpush1.bf16.msra.mxu0 %v6682_v12  ;;  %3877 = vmatpush1.bf16.msra.mxu1 %v6685_v13  ;;  %v6745_v12 = vld [vmem:[#allocation8 + $0x208] ss:$16 sps:$4 sm:$0xff]  }
 0x2a4   :  { %3796 = vmatprep.subr.bf16.mxu0 %v6690_v14  ;;  %3878 = vmatprep.subr.bf16.mxu1 %v6693_v15  ;;  %v6750_v14 = vld [vmem:[#allocation8 + $0x224] ss:$16 sps:$4 sm:$0xff]   ;;  %v6753_v15 = vld [vmem:[#allocation8 + $0x22c] ss:$16 sps:$4 sm:$0xff]  }
 0x2a7   :  { %3797 = vmatpush1.bf16.msra.mxu0 %v6688_v16  ;;  %3879 = vmatpush1.bf16.msra.mxu1 %v6691_v17  ;;  %v6748_v17 = vld [vmem:[#allocation8 + $0x220] ss:$16 sps:$4 sm:$0xff]  }
 0x2a8   :  { %3798 = vmatprep.subr.bf16.mxu0 %v6696_v18  ;;  %3880 = vmatprep.subr.bf16.mxu1 %v6699_v24  ;;  %v6751_v18 = vld [vmem:[#allocation8 + $0x228] ss:$16 sps:$4 sm:$0xff]   ;;  %v6756_v24 = vld [vmem:[#allocation8 + $0x244] ss:$16 sps:$4 sm:$0xff]  }
 0x2ab   :  { %3799 = vmatpush1.bf16.msra.mxu0 %v6694_v25  ;;  %3881 = vmatpush1.bf16.msra.mxu1 %v6697_v26  ;;  %v6759_v25 = vld [vmem:[#allocation8 + $0x24c] ss:$16 sps:$4 sm:$0xff]   ;;  %v6754_v26 = vld [vmem:[#allocation8 + $0x240] ss:$16 sps:$4 sm:$0xff]  }
 0x2ac   :  { %3800 = vmatprep.subr.bf16.mxu0 %v6702_v27  ;;  %3882 = vmatprep.subr.bf16.mxu1 %v6705_v29  ;;  %v6757_v27 = vld [vmem:[#allocation8 + $0x248] ss:$16 sps:$4 sm:$0xff]   ;;  %v6762_v29 = vld [vmem:[#allocation8 + $0x264] ss:$16 sps:$4 sm:$0xff]  }
 0x2af   :  { %3801 = vmatpush1.bf16.msra.mxu0 %v6700_v30  ;;  %3883 = vmatpush1.bf16.msra.mxu1 %v6703_v31  ;;  %v6765_v30 = vld [vmem:[#allocation8 + $0x26c] ss:$16 sps:$4 sm:$0xff]   ;;  %v6760_v31 = vld [vmem:[#allocation8 + $0x260] ss:$16 sps:$4 sm:$0xff]  }
 0x2b0   :  { %3802 = vmatprep.subr.bf16.mxu0 %v6708_v32  ;;  %3884 = vmatprep.subr.bf16.mxu1 %v6711_v33  ;;  %v6763_v32 = vld [vmem:[#allocation8 + $0x268] ss:$16 sps:$4 sm:$0xff]   ;;  %v6768_v33 = vld [vmem:[#allocation8 + $0x284] ss:$16 sps:$4 sm:$0xff]  }
 0x2b3   :  { %3803 = vmatpush1.bf16.msra.mxu0 %v6706_v34  ;;  %3885 = vmatpush1.bf16.msra.mxu1 %v6709_v35  ;;  %v6771_v34 = vld [vmem:[#allocation8 + $0x28c] ss:$16 sps:$4 sm:$0xff]   ;;  %v6766_v35 = vld [vmem:[#allocation8 + $0x280] ss:$16 sps:$4 sm:$0xff]  }
 0x2b4   :  { %3804 = vmatprep.subr.bf16.mxu0 %v6714_v37  ;;  %3886 = vmatprep.subr.bf16.mxu1 %v6717_v38  ;;  %v6769_v37 = vld [vmem:[#allocation8 + $0x288] ss:$16 sps:$4 sm:$0xff]   ;;  %v6774_v38 = vld [vmem:[#allocation8 + $0x2a4] ss:$16 sps:$4 sm:$0xff]  }
 0x2b7   :  { %3805 = vmatpush1.bf16.msra.mxu0 %v6712_v39  ;;  %3887 = vmatpush1.bf16.msra.mxu1 %v6715_v40  ;;  %v6777_v39 = vld [vmem:[#allocation8 + $0x2ac] ss:$16 sps:$4 sm:$0xff]   ;;  %v6772_v40 = vld [vmem:[#allocation8 + $0x2a0] ss:$16 sps:$4 sm:$0xff]  }
 0x2b8   :  { %3806 = vmatprep.subr.bf16.mxu0 %v6720_v41  ;;  %3888 = vmatprep.subr.bf16.mxu1 %v6723_v42  ;;  %v6775_v41 = vld [vmem:[#allocation8 + $0x2a8] ss:$16 sps:$4 sm:$0xff]   ;;  %v6780_v42 = vld [vmem:[#allocation8 + $0x2c4] ss:$16 sps:$4 sm:$0xff]  }
 0x2bb   :  { %3807 = vmatpush1.bf16.msra.mxu0 %v6718_v43  ;;  %3889 = vmatpush1.bf16.msra.mxu1 %v6721_v44  ;;  %v6783_v43 = vld [vmem:[#allocation8 + $0x2cc] ss:$16 sps:$4 sm:$0xff]   ;;  %v6778_v44 = vld [vmem:[#allocation8 + $0x2c0] ss:$16 sps:$4 sm:$0xff]  }
 0x2bc   :  { %3808 = vmatprep.subr.bf16.mxu0 %v6726_v19  ;;  %3890 = vmatprep.subr.bf16.mxu1 %v6729_v45  ;;  %v6781_v19 = vld [vmem:[#allocation8 + $0x2c8] ss:$16 sps:$4 sm:$0xff]   ;;  %v6786_v45 = vld [vmem:[#allocation8 + $0x2e4] ss:$16 sps:$4 sm:$0xff]  }
 0x2bf   :  { %3809 = vmatpush1.bf16.msra.mxu0 %v6724_v46  ;;  %3891 = vmatpush1.bf16.msra.mxu1 %v6727_v47  ;;  %v6789_v46 = vld [vmem:[#allocation8 + $0x2ec] ss:$16 sps:$4 sm:$0xff]   ;;  %v6784_v47 = vld [vmem:[#allocation8 + $0x2e0] ss:$16 sps:$4 sm:$0xff]  }
 0x2c0   :  { %3810 = vmatprep.subr.bf16.mxu0 %v6732_v48  ;;  %3892 = vmatprep.subr.bf16.mxu1 %v6735_v49  ;;  %v6787_v48 = vld [vmem:[#allocation8 + $0x2e8] ss:$16 sps:$4 sm:$0xff]   ;;  %v6792_v49 = vld [vmem:[#allocation8 + $0x304] ss:$16 sps:$4 sm:$0xff]  }
 0x2c3   :  { %3811 = vmatpush1.bf16.msra.mxu0 %v6730_v50  ;;  %3893 = vmatpush1.bf16.msra.mxu1 %v6733_v21  ;;  %v6795_v50 = vld [vmem:[#allocation8 + $0x30c] ss:$16 sps:$4 sm:$0xff]   ;;  %v6790_v21 = vld [vmem:[#allocation8 + $0x300] ss:$16 sps:$4 sm:$0xff]  }
 0x2c4   :  { %3812 = vmatprep.subr.bf16.mxu0 %v6738_v51  ;;  %3894 = vmatprep.subr.bf16.mxu1 %v6741_v52  ;;  %v6793_v51 = vld [vmem:[#allocation8 + $0x308] ss:$16 sps:$4 sm:$0xff]   ;;  %v6798_v52 = vld [vmem:[#allocation8 + $0x324] ss:$16 sps:$4 sm:$0xff]  }
 0x2c7   :  { %3813 = vmatpush1.bf16.msra.mxu0 %v6736_v53  ;;  %3895 = vmatpush1.bf16.msra.mxu1 %v6739_v54  ;;  %v6801_v53 = vld [vmem:[#allocation8 + $0x32c] ss:$16 sps:$4 sm:$0xff]   ;;  %v6796_v54 = vld [vmem:[#allocation8 + $0x320] ss:$16 sps:$4 sm:$0xff]  }
 0x2c8   :  { %3823 = vmatprep.subr.bf16.mxu0 %v6744_v28  ;;  %3905 = vmatprep.subr.bf16.mxu1 %v6747_v55  ;;  %v6799_v28 = vld [vmem:[#allocation8 + $0x328] ss:$16 sps:$4 sm:$0xff]   ;;  %v6804_v55 = vld [vmem:[#allocation8 + $0x344] ss:$16 sps:$4 sm:$0xff]  }
 0x35d   :  { %v2895_v60 = vpop.f32.mrb[4].mxu0  ;;  %v7422_v61 = vpop.f32.mrb[4].mxu1 }
 0x35e   :  { %v5999_v62 = vadd.f32 %v2895_v60, %v2163_v57  ;;  %v2897_v63 = vpop.f32.mrb[5].mxu0  ;;  %v2979_v0 = vpop.f32.mrb[5].mxu1  ;;  %v6807_v57 = vld [vmem:[#allocation8 + $0x34c] ss:$16 sps:$4 sm:$0xff]   ;;  %v6810_v60 = vld [vmem:[#allocation8 + $0x364] ss:$16 sps:$4 sm:$0xff]  }
 0x35f   :  { %v6000_v1 = vadd.f32 %v2897_v63, %v2167_v58  ;;  %v6002_v2 = vadd.f32 %v2979_v0, %v2175_v59  ;;  %v2899_v3 = vpop.f32.mrb[6].mxu0  ;;  %v2981_v4 = vpop.f32.mrb[6].mxu1  ;;  %v6802_v58 = vld [vmem:[#allocation8 + $0x340] ss:$16 sps:$4 sm:$0xff]   ;;  %v6805_v59 = vld [vmem:[#allocation8 + $0x348] ss:$16 sps:$4 sm:$0xff]  }
 0x360   :  { %v2984_v5 = vmax.f32 %v5999_v62, 0.0  ;;  %v2900_v6 = vpop.f32.mrb[7].mxu0  ;;  %v2982_v7 = vpop.f32.mrb[7].mxu1  ;;  %v6813_v62 = vld [vmem:[#allocation8 + $0x36c] ss:$16 sps:$4 sm:$0xff]  }
 0x361   :  { %v2985_v8 = vmax.f32 %v6000_v1, 0.0  ;;  %v2987_v9 = vmax.f32 %v6002_v2, 0.0  ;;  %v6808_v63 = vld [vmem:[#allocation8 + $0x360] ss:$16 sps:$4 sm:$0xff]   ;;  %v6811_v0 = vld [vmem:[#allocation8 + $0x368] ss:$16 sps:$4 sm:$0xff]  }
 0x362   :  { %v2988_v13 = vpack.c.bf16 %v2984_v5, %v2984_v5  ;;  %v6816_v1 = vld [vmem:[#allocation8 + $0x384] ss:$16 sps:$4 sm:$0xff]   ;;  %v6819_v2 = vld [vmem:[#allocation8 + $0x38c] ss:$16 sps:$4 sm:$0xff]   ;;  %v6814_v3 = vld [vmem:[#allocation8 + $0x380] ss:$16 sps:$4 sm:$0xff]  }
 0x363   :  { %v2989_v10 = vpack.c.bf16 %v2985_v8, %v2985_v8  ;;  %v2991_v16 = vpack.c.bf16 %v2987_v9, %v2987_v9  ;;  %v6817_v4 = vld [vmem:[#allocation8 + $0x388] ss:$16 sps:$4 sm:$0xff]   ;;  %v6822_v5 = vld [vmem:[#allocation8 + $0x3a4] ss:$16 sps:$4 sm:$0xff]   ;;  %v6825_v6 = vld [vmem:[#allocation8 + $0x3ac] ss:$16 sps:$4 sm:$0xff]   ;;  %v2171_v9 = vrot.slane %v7414_v56, %v7406_v36 }
 0x364   :  { %v6820_v7 = vld [vmem:[#allocation8 + $0x3a0] ss:$16 sps:$4 sm:$0xff]   ;;  %v6823_v8 = vld [vmem:[#allocation8 + $0x3a8] ss:$16 sps:$4 sm:$0xff]   ;;  %v6840_v56 = vld [vmem:[#allocation10 + $0x4] ss:$16 sps:$4 sm:$0xff]  }
 0x365   :  { %3814 = vmatprep.mubr.bf16.mxu0 %v2989_v10  ;;  %3896 = vmatprep.mubr.bf16.mxu1 %v2989_v10  ;;  %v6828_v10 = vld [vmem:[#allocation8 + $0x3c4] ss:$16 sps:$4 sm:$0xff]  }
 0x366   :  { %3815 = vmatmul.mubr.bf16.vlgmr.msra.gmra.mrb[8].mxu0 %v2988_v13  ;;  %3897 = vmatmul.mubr.bf16.vlgmr.msra.gmra.mrb[8].mxu1 %v2988_v13  ;;  %v6829_v13 = vld [vmem:[#allocation8 + $0x3c8] ss:$16 sps:$4 sm:$0xff]  }
 0x367   :  { %3824 = vmatpush1.bf16.msra.mxu0 %v6742_v11  ;;  %3906 = vmatpush1.bf16.msra.mxu1 %v6745_v12  ;;  %v6831_v11 = vld [vmem:[#allocation8 + $0x3cc] ss:$16 sps:$4 sm:$0xff]   ;;  %v6826_v12 = vld [vmem:[#allocation8 + $0x3c0] ss:$16 sps:$4 sm:$0xff]  }
 0x368   :  { %3855 = vmatprep.mubr.bf16.mxu0 %v2991_v16  ;;  %3937 = vmatprep.mubr.bf16.mxu1 %v2991_v16  ;;  %v6837_v16 = vld [vmem:[#allocation8 + $0x3ec] ss:$16 sps:$4 sm:$0xff]  }
 0x369   :  { %3825 = vmatprep.subr.bf16.mxu0 %v6750_v14  ;;  %3907 = vmatprep.subr.bf16.mxu1 %v6753_v15  ;;  %v6001_v14 = vadd.f32 %v7422_v61, %v2171_v9  ;;  %v6834_v15 = vld [vmem:[#allocation8 + $0x3e4] ss:$16 sps:$4 sm:$0xff]  }
 0x36a   :  { %v6846_v61 = vld [vmem:[#allocation10 + $0x24] ss:$16 sps:$4 sm:$0xff]  }
 0x36b   :  { %3826 = vmatpush1.bf16.msra.mxu0 %v6748_v17  ;;  %3908 = vmatpush1.bf16.msra.mxu1 %v6751_v18  ;;  %v6832_v17 = vld [vmem:[#allocation8 + $0x3e0] ss:$16 sps:$4 sm:$0xff]   ;;  %v6835_v18 = vld [vmem:[#allocation8 + $0x3e8] ss:$16 sps:$4 sm:$0xff]   ;;  %v6912_v9 = vld [vmem:[#allocation10 + $0x184] ss:$16 sps:$4 sm:$0xff]  }
 0x36c   :  { %3827 = vmatprep.subr.bf16.mxu0 %v6756_v24  ;;  %3909 = vmatprep.subr.bf16.mxu1 %v6759_v25  ;;  %v2986_v24 = vmax.f32 %v6001_v14, 0.0  ;;  %v6843_v25 = vld [vmem:[#allocation10 + $0xc] ss:$16 sps:$4 sm:$0xff]  }
 0x36d   :  { %v6921_v14 = vld [vmem:[#allocation10 + $0x1ac] ss:$16 sps:$4 sm:$0xff]  }
 0x36f   :  { %3828 = vmatpush1.bf16.msra.mxu0 %v6754_v26  ;;  %3910 = vmatpush1.bf16.msra.mxu1 %v6757_v27  ;;  %v6838_v26 = vld [vmem:[#allocation10] ss:$16 sps:$4 sm:$0xff]   ;;  %v6841_v27 = vld [vmem:[#allocation10 + $0x8] ss:$16 sps:$4 sm:$0xff]  }
 0x370   :  { %3829 = vmatprep.subr.bf16.mxu0 %v6762_v29  ;;  %3911 = vmatprep.subr.bf16.mxu1 %v6765_v30  ;;  %v2990_v29 = vpack.c.bf16 %v2986_v24, %v2986_v24  ;;  %v6849_v30 = vld [vmem:[#allocation10 + $0x2c] ss:$16 sps:$4 sm:$0xff]   ;;  %v6922_v24 = vld [vmem:[#allocation10 + $0x1c0] ss:$16 sps:$4 sm:$0xff]  }
 0x373   :  { %3830 = vmatpush1.bf16.msra.mxu0 %v6760_v31  ;;  %3912 = vmatpush1.bf16.msra.mxu1 %v6763_v32  ;;  %v6844_v31 = vld [vmem:[#allocation10 + $0x20] ss:$16 sps:$4 sm:$0xff]   ;;  %v6847_v32 = vld [vmem:[#allocation10 + $0x28] ss:$16 sps:$4 sm:$0xff]  }
 0x374   :  { %3831 = vmatprep.subr.bf16.mxu0 %v6768_v33  ;;  %3913 = vmatprep.subr.bf16.mxu1 %v6771_v34  ;;  %v6852_v33 = vld [vmem:[#allocation10 + $0x44] ss:$16 sps:$4 sm:$0xff]   ;;  %v6855_v34 = vld [vmem:[#allocation10 + $0x4c] ss:$16 sps:$4 sm:$0xff]  }
 0x377   :  { %3832 = vmatpush1.bf16.msra.mxu0 %v6766_v35  ;;  %3914 = vmatpush1.bf16.msra.mxu1 %v6769_v37  ;;  %v6850_v35 = vld [vmem:[#allocation10 + $0x40] ss:$16 sps:$4 sm:$0xff]   ;;  %v6853_v37 = vld [vmem:[#allocation10 + $0x48] ss:$16 sps:$4 sm:$0xff]  }
 0x378   :  { %3833 = vmatprep.subr.bf16.mxu0 %v6774_v38  ;;  %3915 = vmatprep.subr.bf16.mxu1 %v6777_v39  ;;  %v6858_v38 = vld [vmem:[#allocation10 + $0x64] ss:$16 sps:$4 sm:$0xff]   ;;  %v6861_v39 = vld [vmem:[#allocation10 + $0x6c] ss:$16 sps:$4 sm:$0xff]  }
 0x37b   :  { %3834 = vmatpush1.bf16.msra.mxu0 %v6772_v40  ;;  %3916 = vmatpush1.bf16.msra.mxu1 %v6775_v41  ;;  %v6856_v40 = vld [vmem:[#allocation10 + $0x60] ss:$16 sps:$4 sm:$0xff]   ;;  %v6859_v41 = vld [vmem:[#allocation10 + $0x68] ss:$16 sps:$4 sm:$0xff]  }
 0x37c   :  { %3835 = vmatprep.subr.bf16.mxu0 %v6780_v42  ;;  %3917 = vmatprep.subr.bf16.mxu1 %v6783_v43  ;;  %v6864_v42 = vld [vmem:[#allocation10 + $0x84] ss:$16 sps:$4 sm:$0xff]   ;;  %v6867_v43 = vld [vmem:[#allocation10 + $0x8c] ss:$16 sps:$4 sm:$0xff]  }
 0x37f   :  { %3836 = vmatpush1.bf16.msra.mxu0 %v6778_v44  ;;  %3918 = vmatpush1.bf16.msra.mxu1 %v6781_v19  ;;  %v6862_v44 = vld [vmem:[#allocation10 + $0x80] ss:$16 sps:$4 sm:$0xff]   ;;  %v6865_v19 = vld [vmem:[#allocation10 + $0x88] ss:$16 sps:$4 sm:$0xff]  }
 0x380   :  { %3837 = vmatprep.subr.bf16.mxu0 %v6786_v45  ;;  %3919 = vmatprep.subr.bf16.mxu1 %v6789_v46  ;;  %v6870_v45 = vld [vmem:[#allocation10 + $0xa4] ss:$16 sps:$4 sm:$0xff]   ;;  %v6873_v46 = vld [vmem:[#allocation10 + $0xac] ss:$16 sps:$4 sm:$0xff]  }
 0x383   :  { %3838 = vmatpush1.bf16.msra.mxu0 %v6784_v47  ;;  %3920 = vmatpush1.bf16.msra.mxu1 %v6787_v48  ;;  %v6868_v47 = vld [vmem:[#allocation10 + $0xa0] ss:$16 sps:$4 sm:$0xff]   ;;  %v6871_v48 = vld [vmem:[#allocation10 + $0xa8] ss:$16 sps:$4 sm:$0xff]  }
 0x384   :  { %3839 = vmatprep.subr.bf16.mxu0 %v6792_v49  ;;  %3921 = vmatprep.subr.bf16.mxu1 %v6795_v50  ;;  %v6876_v49 = vld [vmem:[#allocation10 + $0xc4] ss:$16 sps:$4 sm:$0xff]   ;;  %v6879_v50 = vld [vmem:[#allocation10 + $0xcc] ss:$16 sps:$4 sm:$0xff]  }
 0x387   :  { %3840 = vmatpush1.bf16.msra.mxu0 %v6790_v21  ;;  %3922 = vmatpush1.bf16.msra.mxu1 %v6793_v51  ;;  %v6874_v21 = vld [vmem:[#allocation10 + $0xc0] ss:$16 sps:$4 sm:$0xff]   ;;  %v6877_v51 = vld [vmem:[#allocation10 + $0xc8] ss:$16 sps:$4 sm:$0xff]  }
 0x388   :  { %3841 = vmatprep.subr.bf16.mxu0 %v6798_v52  ;;  %3923 = vmatprep.subr.bf16.mxu1 %v6801_v53  ;;  %v6882_v52 = vld [vmem:[#allocation10 + $0xe4] ss:$16 sps:$4 sm:$0xff]   ;;  %v6885_v53 = vld [vmem:[#allocation10 + $0xec] ss:$16 sps:$4 sm:$0xff]  }
 0x38b   :  { %3842 = vmatpush1.bf16.msra.mxu0 %v6796_v54  ;;  %3924 = vmatpush1.bf16.msra.mxu1 %v6799_v28  ;;  %v6880_v54 = vld [vmem:[#allocation10 + $0xe0] ss:$16 sps:$4 sm:$0xff]   ;;  %v6883_v28 = vld [vmem:[#allocation10 + $0xe8] ss:$16 sps:$4 sm:$0xff]  }
 0x38c   :  { %3843 = vmatprep.subr.bf16.mxu0 %v6804_v55  ;;  %3925 = vmatprep.subr.bf16.mxu1 %v6807_v57  ;;  %v6888_v55 = vld [vmem:[#allocation10 + $0x104] ss:$16 sps:$4 sm:$0xff]   ;;  %v6891_v57 = vld [vmem:[#allocation10 + $0x10c] ss:$16 sps:$4 sm:$0xff]  }
 0x38f   :  { %3844 = vmatpush1.bf16.msra.mxu0 %v6802_v58  ;;  %3926 = vmatpush1.bf16.msra.mxu1 %v6805_v59  ;;  %v6886_v58 = vld [vmem:[#allocation10 + $0x100] ss:$16 sps:$4 sm:$0xff]   ;;  %v6889_v59 = vld [vmem:[#allocation10 + $0x108] ss:$16 sps:$4 sm:$0xff]  }
 0x390   :  { %3845 = vmatprep.subr.bf16.mxu0 %v6810_v60  ;;  %3927 = vmatprep.subr.bf16.mxu1 %v6813_v62  ;;  %v6894_v60 = vld [vmem:[#allocation10 + $0x124] ss:$16 sps:$4 sm:$0xff]   ;;  %v6897_v62 = vld [vmem:[#allocation10 + $0x12c] ss:$16 sps:$4 sm:$0xff]  }
 0x393   :  { %3846 = vmatpush1.bf16.msra.mxu0 %v6808_v63  ;;  %3928 = vmatpush1.bf16.msra.mxu1 %v6811_v0  ;;  %v6892_v63 = vld [vmem:[#allocation10 + $0x120] ss:$16 sps:$4 sm:$0xff]   ;;  %v6895_v0 = vld [vmem:[#allocation10 + $0x128] ss:$16 sps:$4 sm:$0xff]  }
 0x394   :  { %3847 = vmatprep.subr.bf16.mxu0 %v6816_v1  ;;  %3929 = vmatprep.subr.bf16.mxu1 %v6819_v2  ;;  %v6900_v1 = vld [vmem:[#allocation10 + $0x144] ss:$16 sps:$4 sm:$0xff]   ;;  %v6903_v2 = vld [vmem:[#allocation10 + $0x14c] ss:$16 sps:$4 sm:$0xff]  }
 0x397   :  { %3848 = vmatpush1.bf16.msra.mxu0 %v6814_v3  ;;  %3930 = vmatpush1.bf16.msra.mxu1 %v6817_v4  ;;  %v6898_v3 = vld [vmem:[#allocation10 + $0x140] ss:$16 sps:$4 sm:$0xff]   ;;  %v6901_v4 = vld [vmem:[#allocation10 + $0x148] ss:$16 sps:$4 sm:$0xff]  }
 0x398   :  { %3849 = vmatprep.subr.bf16.mxu0 %v6822_v5  ;;  %3931 = vmatprep.subr.bf16.mxu1 %v6825_v6  ;;  %v6906_v5 = vld [vmem:[#allocation10 + $0x164] ss:$16 sps:$4 sm:$0xff]   ;;  %v6909_v6 = vld [vmem:[#allocation10 + $0x16c] ss:$16 sps:$4 sm:$0xff]  }
 0x39b   :  { %3850 = vmatpush1.bf16.msra.mxu0 %v6820_v7  ;;  %3932 = vmatpush1.bf16.msra.mxu1 %v6823_v8  ;;  %v6904_v7 = vld [vmem:[#allocation10 + $0x160] ss:$16 sps:$4 sm:$0xff]   ;;  %v6907_v8 = vld [vmem:[#allocation10 + $0x168] ss:$16 sps:$4 sm:$0xff]  }
 0x39c   :  { %3851 = vmatprep.subr.bf16.mxu0 %v6828_v10  ;;  %3933 = vmatprep.subr.bf16.mxu1 %v6831_v11  ;;  %v6915_v10 = vld [vmem:[#allocation10 + $0x18c] ss:$16 sps:$4 sm:$0xff]   ;;  %v6910_v11 = vld [vmem:[#allocation10 + $0x180] ss:$16 sps:$4 sm:$0xff]  }
 0x39f   :  { %3852 = vmatpush1.bf16.msra.mxu0 %v6826_v12  ;;  %3934 = vmatpush1.bf16.msra.mxu1 %v6829_v13  ;;  %v6913_v12 = vld [vmem:[#allocation10 + $0x188] ss:$16 sps:$4 sm:$0xff]   ;;  %v6918_v13 = vld [vmem:[#allocation10 + $0x1a4] ss:$16 sps:$4 sm:$0xff]  }
 0x3a0   :  { %3853 = vmatprep.subr.bf16.mxu0 %v6834_v15  ;;  %3935 = vmatprep.subr.bf16.mxu1 %v6837_v16  ;;  %v6916_v15 = vld [vmem:[#allocation10 + $0x1a0] ss:$16 sps:$4 sm:$0xff]   ;;  %v6919_v16 = vld [vmem:[#allocation10 + $0x1a8] ss:$16 sps:$4 sm:$0xff]  }
 0x3a3   :  { %3854 = vmatpush1.bf16.msra.mxu0 %v6832_v17  ;;  %3936 = vmatpush1.bf16.msra.mxu1 %v6835_v18  ;;  %v6924_v17 = vld [vmem:[#allocation10 + $0x1c4] ss:$16 sps:$4 sm:$0xff]   ;;  %v6927_v18 = vld [vmem:[#allocation10 + $0x1cc] ss:$16 sps:$4 sm:$0xff]  }
 0x3a4   :  { %4744 = vmatprep.subr.bf16.mxu0 %v6840_v56  ;;  %4826 = vmatprep.subr.bf16.mxu1 %v6843_v25  ;;  %v6925_v56 = vld [vmem:[#allocation10 + $0x1c8] ss:$16 sps:$4 sm:$0xff]   ;;  %v6930_v25 = vld [vmem:[#allocation10 + $0x1e4] ss:$16 sps:$4 sm:$0xff]  }
 0x3a6   :  { %3856 = vmatmul.mubr.bf16.vlgmr.msra.gmra.mrb[8].mxu0 %v2990_v29  ;;  %3938 = vmatmul.mubr.bf16.vlgmr.msra.gmra.mrb[8].mxu1 %v2990_v29  ;;  %v6931_v29 = vld [vmem:[#allocation10 + $0x1e8] ss:$16 sps:$4 sm:$0xff]  }
 0x3a7   :  { %4745 = vmatpush1.bf16.msra.mxu0 %v6838_v26  ;;  %4827 = vmatpush1.bf16.msra.mxu1 %v6841_v27  ;;  %v6933_v26 = vld [vmem:[#allocation10 + $0x1ec] ss:$16 sps:$4 sm:$0xff]   ;;  %v6928_v27 = vld [vmem:[#allocation10 + $0x1e0] ss:$16 sps:$4 sm:$0xff]  }
 0x3a8   :  { %4746 = vmatprep.subr.bf16.mxu0 %v6846_v61  ;;  %4828 = vmatprep.subr.bf16.mxu1 %v6849_v30  ;;  %v6936_v61 = vld [vmem:[#allocation10 + $0x204] ss:$16 sps:$4 sm:$0xff]   ;;  %v6939_v30 = vld [vmem:[#allocation10 + $0x20c] ss:$16 sps:$4 sm:$0xff]  }
 0x3ab   :  { %4747 = vmatpush1.bf16.msra.mxu0 %v6844_v31  ;;  %4829 = vmatpush1.bf16.msra.mxu1 %v6847_v32  ;;  %v7430_v31 = vld [vmem:[%s7471_s6] sm:$0xf] }
 0x3ac   :  { %4748 = vmatprep.subr.bf16.mxu0 %v6852_v33  ;;  %4830 = vmatprep.subr.bf16.mxu1 %v6855_v34  ;;  %v3125_v32 = vrot.slane %v7430_v31, %v7384_v20  ;;  %v3129_v33 = vrot.slane %v7430_v31, %v7392_v22  ;;  %v3137_v34 = vrot.slane %v7430_v31, %v7395_v23 }
 0x3af   :  { %4749 = vmatpush1.bf16.msra.mxu0 %v6850_v35  ;;  %4831 = vmatpush1.bf16.msra.mxu1 %v6853_v37 }
 0x3b0   :  { %4750 = vmatprep.subr.bf16.mxu0 %v6858_v38  ;;  %4832 = vmatprep.subr.bf16.mxu1 %v6861_v39 }
 0x3b3   :  { %4751 = vmatpush1.bf16.msra.mxu0 %v6856_v40  ;;  %4833 = vmatpush1.bf16.msra.mxu1 %v6859_v41 }
 0x3b4   :  { %4752 = vmatprep.subr.bf16.mxu0 %v6864_v42  ;;  %4834 = vmatprep.subr.bf16.mxu1 %v6867_v43 }
 0x3b7   :  { %4753 = vmatpush1.bf16.msra.mxu0 %v6862_v44  ;;  %4835 = vmatpush1.bf16.msra.mxu1 %v6865_v19 }
 0x3b8   :  { %4754 = vmatprep.subr.bf16.mxu0 %v6870_v45  ;;  %4836 = vmatprep.subr.bf16.mxu1 %v6873_v46 }
 0x3bb   :  { %4755 = vmatpush1.bf16.msra.mxu0 %v6868_v47  ;;  %4837 = vmatpush1.bf16.msra.mxu1 %v6871_v48 }
 0x3bc   :  { %4756 = vmatprep.subr.bf16.mxu0 %v6876_v49  ;;  %4838 = vmatprep.subr.bf16.mxu1 %v6879_v50  ;;  %v6934_v50 = vld [vmem:[#allocation10 + $0x200] ss:$16 sps:$4 sm:$0xff]  }
 0x3bf   :  { %4757 = vmatpush1.bf16.msra.mxu0 %v6874_v21  ;;  %4839 = vmatpush1.bf16.msra.mxu1 %v6877_v51  ;;  %v6937_v21 = vld [vmem:[#allocation10 + $0x208] ss:$16 sps:$4 sm:$0xff]  }
 0x3c0   :  { %4758 = vmatprep.subr.bf16.mxu0 %v6882_v52  ;;  %4840 = vmatprep.subr.bf16.mxu1 %v6885_v53  ;;  %v6942_v52 = vld [vmem:[#allocation10 + $0x224] ss:$16 sps:$4 sm:$0xff]   ;;  %v6945_v53 = vld [vmem:[#allocation10 + $0x22c] ss:$16 sps:$4 sm:$0xff]  }
 0x3c3   :  { %4759 = vmatpush1.bf16.msra.mxu0 %v6880_v54  ;;  %4841 = vmatpush1.bf16.msra.mxu1 %v6883_v28  ;;  %v6940_v28 = vld [vmem:[#allocation10 + $0x220] ss:$16 sps:$4 sm:$0xff]  }
 0x3c4   :  { %4760 = vmatprep.subr.bf16.mxu0 %v6888_v55  ;;  %4842 = vmatprep.subr.bf16.mxu1 %v6891_v57  ;;  %v6943_v55 = vld [vmem:[#allocation10 + $0x228] ss:$16 sps:$4 sm:$0xff]   ;;  %v6948_v57 = vld [vmem:[#allocation10 + $0x244] ss:$16 sps:$4 sm:$0xff]  }
 0x3c7   :  { %4761 = vmatpush1.bf16.msra.mxu0 %v6886_v58  ;;  %4843 = vmatpush1.bf16.msra.mxu1 %v6889_v59  ;;  %v6951_v58 = vld [vmem:[#allocation10 + $0x24c] ss:$16 sps:$4 sm:$0xff]   ;;  %v6946_v59 = vld [vmem:[#allocation10 + $0x240] ss:$16 sps:$4 sm:$0xff]  }
 0x3c8   :  { %4762 = vmatprep.subr.bf16.mxu0 %v6894_v60  ;;  %4844 = vmatprep.subr.bf16.mxu1 %v6897_v62  ;;  %v6949_v60 = vld [vmem:[#allocation10 + $0x248] ss:$16 sps:$4 sm:$0xff]   ;;  %v6954_v62 = vld [vmem:[#allocation10 + $0x264] ss:$16 sps:$4 sm:$0xff]  }
 0x3cb   :  { %4763 = vmatpush1.bf16.msra.mxu0 %v6892_v63  ;;  %4845 = vmatpush1.bf16.msra.mxu1 %v6895_v0  ;;  %v6957_v63 = vld [vmem:[#allocation10 + $0x26c] ss:$16 sps:$4 sm:$0xff]   ;;  %v6952_v0 = vld [vmem:[#allocation10 + $0x260] ss:$16 sps:$4 sm:$0xff]  }
 0x3cc   :  { %4764 = vmatprep.subr.bf16.mxu0 %v6900_v1  ;;  %4846 = vmatprep.subr.bf16.mxu1 %v6903_v2  ;;  %v6955_v1 = vld [vmem:[#allocation10 + $0x268] ss:$16 sps:$4 sm:$0xff]   ;;  %v6960_v2 = vld [vmem:[#allocation10 + $0x284] ss:$16 sps:$4 sm:$0xff]  }
 0x3cf   :  { %4765 = vmatpush1.bf16.msra.mxu0 %v6898_v3  ;;  %4847 = vmatpush1.bf16.msra.mxu1 %v6901_v4  ;;  %v6963_v3 = vld [vmem:[#allocation10 + $0x28c] ss:$16 sps:$4 sm:$0xff]   ;;  %v6958_v4 = vld [vmem:[#allocation10 + $0x280] ss:$16 sps:$4 sm:$0xff]  }
 0x3d0   :  { %4766 = vmatprep.subr.bf16.mxu0 %v6906_v5  ;;  %4848 = vmatprep.subr.bf16.mxu1 %v6909_v6  ;;  %v6961_v5 = vld [vmem:[#allocation10 + $0x288] ss:$16 sps:$4 sm:$0xff]   ;;  %v6966_v6 = vld [vmem:[#allocation10 + $0x2a4] ss:$16 sps:$4 sm:$0xff]  }
 0x3d3   :  { %4767 = vmatpush1.bf16.msra.mxu0 %v6904_v7  ;;  %4849 = vmatpush1.bf16.msra.mxu1 %v6907_v8  ;;  %v6969_v7 = vld [vmem:[#allocation10 + $0x2ac] ss:$16 sps:$4 sm:$0xff]   ;;  %v6964_v8 = vld [vmem:[#allocation10 + $0x2a0] ss:$16 sps:$4 sm:$0xff]  }
 0x3d4   :  { %4768 = vmatprep.subr.bf16.mxu0 %v6912_v9  ;;  %4850 = vmatprep.subr.bf16.mxu1 %v6915_v10  ;;  %v6967_v9 = vld [vmem:[#allocation10 + $0x2a8] ss:$16 sps:$4 sm:$0xff]   ;;  %v6972_v10 = vld [vmem:[#allocation10 + $0x2c4] ss:$16 sps:$4 sm:$0xff]  }
 0x3d7   :  { %4769 = vmatpush1.bf16.msra.mxu0 %v6910_v11  ;;  %4851 = vmatpush1.bf16.msra.mxu1 %v6913_v12  ;;  %v6975_v11 = vld [vmem:[#allocation10 + $0x2cc] ss:$16 sps:$4 sm:$0xff]   ;;  %v6970_v12 = vld [vmem:[#allocation10 + $0x2c0] ss:$16 sps:$4 sm:$0xff]  }
 0x3d8   :  { %4770 = vmatprep.subr.bf16.mxu0 %v6918_v13  ;;  %4852 = vmatprep.subr.bf16.mxu1 %v6921_v14  ;;  %v6973_v13 = vld [vmem:[#allocation10 + $0x2c8] ss:$16 sps:$4 sm:$0xff]   ;;  %v6978_v14 = vld [vmem:[#allocation10 + $0x2e4] ss:$16 sps:$4 sm:$0xff]  }
 0x3db   :  { %4771 = vmatpush1.bf16.msra.mxu0 %v6916_v15  ;;  %4853 = vmatpush1.bf16.msra.mxu1 %v6919_v16  ;;  %v6981_v15 = vld [vmem:[#allocation10 + $0x2ec] ss:$16 sps:$4 sm:$0xff]   ;;  %v6976_v16 = vld [vmem:[#allocation10 + $0x2e0] ss:$16 sps:$4 sm:$0xff]  }
 0x3dc   :  { %4772 = vmatprep.subr.bf16.mxu0 %v6924_v17  ;;  %4854 = vmatprep.subr.bf16.mxu1 %v6927_v18  ;;  %v6979_v17 = vld [vmem:[#allocation10 + $0x2e8] ss:$16 sps:$4 sm:$0xff]   ;;  %v6984_v18 = vld [vmem:[#allocation10 + $0x304] ss:$16 sps:$4 sm:$0xff]  }
 0x3df   :  { %4773 = vmatpush1.bf16.msra.mxu0 %v6922_v24  ;;  %4855 = vmatpush1.bf16.msra.mxu1 %v6925_v56  ;;  %v6987_v24 = vld [vmem:[#allocation10 + $0x30c] ss:$16 sps:$4 sm:$0xff]   ;;  %v6982_v56 = vld [vmem:[#allocation10 + $0x300] ss:$16 sps:$4 sm:$0xff]  }
 0x3e0   :  { %4774 = vmatprep.subr.bf16.mxu0 %v6930_v25  ;;  %4856 = vmatprep.subr.bf16.mxu1 %v6933_v26  ;;  %v6985_v25 = vld [vmem:[#allocation10 + $0x308] ss:$16 sps:$4 sm:$0xff]   ;;  %v6990_v26 = vld [vmem:[#allocation10 + $0x324] ss:$16 sps:$4 sm:$0xff]  }
 0x3e3   :  { %4775 = vmatpush1.bf16.msra.mxu0 %v6928_v27  ;;  %4857 = vmatpush1.bf16.msra.mxu1 %v6931_v29  ;;  %v6993_v27 = vld [vmem:[#allocation10 + $0x32c] ss:$16 sps:$4 sm:$0xff]   ;;  %v6988_v29 = vld [vmem:[#allocation10 + $0x320] ss:$16 sps:$4 sm:$0xff]  }
 0x3e4   :  { %4785 = vmatprep.subr.bf16.mxu0 %v6936_v61  ;;  %4867 = vmatprep.subr.bf16.mxu1 %v6939_v30  ;;  %v6991_v61 = vld [vmem:[#allocation10 + $0x328] ss:$16 sps:$4 sm:$0xff]   ;;  %v6996_v30 = vld [vmem:[#allocation10 + $0x344] ss:$16 sps:$4 sm:$0xff]  }
 0x479   :  { %v3857_v35 = vpop.f32.mrb[8].mxu0  ;;  %v7438_v37 = vpop.f32.mrb[8].mxu1 }
 0x47a   :  { %v6003_v38 = vadd.f32 %v3857_v35, %v3125_v32  ;;  %v3859_v39 = vpop.f32.mrb[9].mxu0  ;;  %v3941_v40 = vpop.f32.mrb[9].mxu1  ;;  %v6999_v32 = vld [vmem:[#allocation10 + $0x34c] ss:$16 sps:$4 sm:$0xff]   ;;  %v7002_v35 = vld [vmem:[#allocation10 + $0x364] ss:$16 sps:$4 sm:$0xff]  }
 0x47b   :  { %v6004_v41 = vadd.f32 %v3859_v39, %v3129_v33  ;;  %v6006_v42 = vadd.f32 %v3941_v40, %v3137_v34  ;;  %v3861_v43 = vpop.f32.mrb[10].mxu0  ;;  %v3943_v44 = vpop.f32.mrb[10].mxu1  ;;  %v6994_v33 = vld [vmem:[#allocation10 + $0x340] ss:$16 sps:$4 sm:$0xff]   ;;  %v6997_v34 = vld [vmem:[#allocation10 + $0x348] ss:$16 sps:$4 sm:$0xff]  }
 0x47c   :  { %v3946_v19 = vmax.f32 %v6003_v38, 0.0  ;;  %v3862_v45 = vpop.f32.mrb[11].mxu0  ;;  %v3944_v46 = vpop.f32.mrb[11].mxu1  ;;  %v7005_v38 = vld [vmem:[#allocation10 + $0x36c] ss:$16 sps:$4 sm:$0xff]  }
 0x47d   :  { %v3947_v47 = vmax.f32 %v6004_v41, 0.0  ;;  %v3949_v48 = vmax.f32 %v6006_v42, 0.0  ;;  %v7000_v39 = vld [vmem:[#allocation10 + $0x360] ss:$16 sps:$4 sm:$0xff]   ;;  %v7003_v40 = vld [vmem:[#allocation10 + $0x368] ss:$16 sps:$4 sm:$0xff]  }
 0x47e   :  { %v3950_v51 = vpack.c.bf16 %v3946_v19, %v3946_v19  ;;  %v7008_v41 = vld [vmem:[#allocation10 + $0x384] ss:$16 sps:$4 sm:$0xff]   ;;  %v7011_v42 = vld [vmem:[#allocation10 + $0x38c] ss:$16 sps:$4 sm:$0xff]   ;;  %v7006_v43 = vld [vmem:[#allocation10 + $0x380] ss:$16 sps:$4 sm:$0xff]  }
 0x47f   :  { %v3951_v49 = vpack.c.bf16 %v3947_v47, %v3947_v47  ;;  %v3953_v54 = vpack.c.bf16 %v3949_v48, %v3949_v48  ;;  %v7009_v44 = vld [vmem:[#allocation10 + $0x388] ss:$16 sps:$4 sm:$0xff]   ;;  %v7014_v19 = vld [vmem:[#allocation10 + $0x3a4] ss:$16 sps:$4 sm:$0xff]   ;;  %v7017_v45 = vld [vmem:[#allocation10 + $0x3ac] ss:$16 sps:$4 sm:$0xff]   ;;  %v3133_v48 = vrot.slane %v7430_v31, %v7406_v36 }
 0x480   :  { %v7012_v46 = vld [vmem:[#allocation10 + $0x3a0] ss:$16 sps:$4 sm:$0xff]   ;;  %v7015_v47 = vld [vmem:[#allocation10 + $0x3a8] ss:$16 sps:$4 sm:$0xff]  }
 0x481   :  { %4776 = vmatprep.mubr.bf16.mxu0 %v3951_v49  ;;  %4858 = vmatprep.mubr.bf16.mxu1 %v3951_v49  ;;  %v7020_v49 = vld [vmem:[#allocation10 + $0x3c4] ss:$16 sps:$4 sm:$0xff]  }
 0x482   :  { %4777 = vmatmul.mubr.bf16.vlgmr.msra.gmra.mrb[12].mxu0 %v3950_v51  ;;  %4859 = vmatmul.mubr.bf16.vlgmr.msra.gmra.mrb[12].mxu1 %v3950_v51  ;;  %v7021_v51 = vld [vmem:[#allocation10 + $0x3c8] ss:$16 sps:$4 sm:$0xff]   ;;  %v7030_v31 = vld [vmem:[#allocation11 + $0x40] sm:$0xff]  }
 0x483   :  { %4786 = vmatpush1.bf16.msra.mxu0 %v6934_v50  ;;  %4868 = vmatpush1.bf16.msra.mxu1 %v6937_v21  ;;  %v7023_v50 = vld [vmem:[#allocation10 + $0x3cc] ss:$16 sps:$4 sm:$0xff]   ;;  %v7018_v21 = vld [vmem:[#allocation10 + $0x3c0] ss:$16 sps:$4 sm:$0xff]  }
 0x484   :  { %4817 = vmatprep.mubr.bf16.mxu0 %v3953_v54  ;;  %4899 = vmatprep.mubr.bf16.mxu1 %v3953_v54  ;;  %v7029_v54 = vld [vmem:[#allocation10 + $0x3ec] ss:$16 sps:$4 sm:$0xff]  }
 0x485   :  { %4787 = vmatprep.subr.bf16.mxu0 %v6942_v52  ;;  %4869 = vmatprep.subr.bf16.mxu1 %v6945_v53  ;;  %v6005_v52 = vadd.f32 %v7438_v37, %v3133_v48  ;;  %v7026_v53 = vld [vmem:[#allocation10 + $0x3e4] ss:$16 sps:$4 sm:$0xff]   ;;  %v7034_v37 = vld [vmem:[#allocation11 + $0x48] sm:$0xff]  }
 0x487   :  { %4788 = vmatpush1.bf16.msra.mxu0 %v6940_v28  ;;  %4870 = vmatpush1.bf16.msra.mxu1 %v6943_v55  ;;  %v7024_v28 = vld [vmem:[#allocation10 + $0x3e0] ss:$16 sps:$4 sm:$0xff]   ;;  %v7027_v55 = vld [vmem:[#allocation10 + $0x3e8] ss:$16 sps:$4 sm:$0xff]  }
 0x488   :  { %4789 = vmatprep.subr.bf16.mxu0 %v6948_v57  ;;  %4871 = vmatprep.subr.bf16.mxu1 %v6951_v58  ;;  %v3948_v57 = vmax.f32 %v6005_v52, 0.0  ;;  %v7031_v58 = vld [vmem:[#allocation11 + $0xc0] sm:$0xff]  }
 0x48b   :  { %4790 = vmatpush1.bf16.msra.mxu0 %v6946_v59  ;;  %4872 = vmatpush1.bf16.msra.mxu1 %v6949_v60  ;;  %v7032_v59 = vld [vmem:[#allocation11] sm:$0xff]  }
 0x48c   :  { %4791 = vmatprep.subr.bf16.mxu0 %v6954_v62  ;;  %4873 = vmatprep.subr.bf16.mxu1 %v6957_v63  ;;  %v7033_v60 = vld [vmem:[#allocation11 + $0x80] sm:$0xff]   ;;  %v3952_v62 = vpack.c.bf16 %v3948_v57, %v3948_v57  ;;  %v7035_v63 = vld [vmem:[#allocation11 + $0xc8] sm:$0xff]  }
 0x48f   :  { %4792 = vmatpush1.bf16.msra.mxu0 %v6952_v0  ;;  %4874 = vmatpush1.bf16.msra.mxu1 %v6955_v1  ;;  %v7036_v0 = vld [vmem:[#allocation11 + $0x8] sm:$0xff]  }
 0x490   :  { %4793 = vmatprep.subr.bf16.mxu0 %v6960_v2  ;;  %4875 = vmatprep.subr.bf16.mxu1 %v6963_v3  ;;  %v7037_v1 = vld [vmem:[#allocation11 + $0x88] sm:$0xff]   ;;  %v7038_v2 = vld [vmem:[#allocation11 + $0x50] sm:$0xff]  }
 0x491   :  { %v7039_v3 = vld [vmem:[#allocation11 + $0xd0] sm:$0xff]  }
 0x493   :  { %4794 = vmatpush1.bf16.msra.mxu0 %v6958_v4  ;;  %4876 = vmatpush1.bf16.msra.mxu1 %v6961_v5  ;;  %v7040_v4 = vld [vmem:[#allocation11 + $0x10] sm:$0xff]  }
 0x494   :  { %4795 = vmatprep.subr.bf16.mxu0 %v6966_v6  ;;  %4877 = vmatprep.subr.bf16.mxu1 %v6969_v7  ;;  %v7041_v5 = vld [vmem:[#allocation11 + $0x90] sm:$0xff]   ;;  %v7042_v6 = vld [vmem:[#allocation11 + $0x58] sm:$0xff]  }
 0x495   :  { %v7043_v7 = vld [vmem:[#allocation11 + $0xd8] sm:$0xff]  }
 0x497   :  { %4796 = vmatpush1.bf16.msra.mxu0 %v6964_v8  ;;  %4878 = vmatpush1.bf16.msra.mxu1 %v6967_v9  ;;  %v7044_v8 = vld [vmem:[#allocation11 + $0x18] sm:$0xff]  }
 0x498   :  { %4797 = vmatprep.subr.bf16.mxu0 %v6972_v10  ;;  %4879 = vmatprep.subr.bf16.mxu1 %v6975_v11  ;;  %v7045_v9 = vld [vmem:[#allocation11 + $0x98] sm:$0xff]   ;;  %v7046_v10 = vld [vmem:[#allocation11 + $0x60] sm:$0xff]  }
 0x499   :  { %v7047_v11 = vld [vmem:[#allocation11 + $0xe0] sm:$0xff]  }
 0x49b   :  { %4798 = vmatpush1.bf16.msra.mxu0 %v6970_v12  ;;  %4880 = vmatpush1.bf16.msra.mxu1 %v6973_v13  ;;  %v7048_v12 = vld [vmem:[#allocation11 + $0x20] sm:$0xff]  }
 0x49c   :  { %4799 = vmatprep.subr.bf16.mxu0 %v6978_v14  ;;  %4881 = vmatprep.subr.bf16.mxu1 %v6981_v15  ;;  %v7049_v13 = vld [vmem:[#allocation11 + $0xa0] sm:$0xff]   ;;  %v7050_v14 = vld [vmem:[#allocation11 + $0x68] sm:$0xff]  }
 0x49d   :  { %v7051_v15 = vld [vmem:[#allocation11 + $0xe8] sm:$0xff]  }
 0x49f   :  { %4800 = vmatpush1.bf16.msra.mxu0 %v6976_v16  ;;  %4882 = vmatpush1.bf16.msra.mxu1 %v6979_v17  ;;  %v7052_v16 = vld [vmem:[#allocation11 + $0x28] sm:$0xff]  }
 0x4a0   :  { %4801 = vmatprep.subr.bf16.mxu0 %v6984_v18  ;;  %4883 = vmatprep.subr.bf16.mxu1 %v6987_v24  ;;  %v7053_v17 = vld [vmem:[#allocation11 + $0xa8] sm:$0xff]   ;;  %v7054_v18 = vld [vmem:[#allocation11 + $0x70] sm:$0xff]  }
 0x4a1   :  { %v7055_v24 = vld [vmem:[#allocation11 + $0xf0] sm:$0xff]  }
 0x4a3   :  { %4802 = vmatpush1.bf16.msra.mxu0 %v6982_v56  ;;  %4884 = vmatpush1.bf16.msra.mxu1 %v6985_v25  ;;  %v7056_v56 = vld [vmem:[#allocation11 + $0x30] sm:$0xff]  }
 0x4a4   :  { %4803 = vmatprep.subr.bf16.mxu0 %v6990_v26  ;;  %4885 = vmatprep.subr.bf16.mxu1 %v6993_v27  ;;  %v7057_v25 = vld [vmem:[#allocation11 + $0xb0] sm:$0xff]   ;;  %v7058_v26 = vld [vmem:[#allocation11 + $0x78] sm:$0xff]  }
 0x4a5   :  { %v7059_v27 = vld [vmem:[#allocation11 + $0xf8] sm:$0xff]  }
 0x4a7   :  { %4804 = vmatpush1.bf16.msra.mxu0 %v6988_v29  ;;  %4886 = vmatpush1.bf16.msra.mxu1 %v6991_v61  ;;  %v7060_v29 = vld [vmem:[#allocation11 + $0x38] sm:$0xff]  }
 0x4a8   :  { %4805 = vmatprep.subr.bf16.mxu0 %v6996_v30  ;;  %4887 = vmatprep.subr.bf16.mxu1 %v6999_v32  ;;  %v7061_v61 = vld [vmem:[#allocation11 + $0xb8] sm:$0xff]   ;;  %v4082_v30 = vld [vmem:[%s7473_s8] sm:$0xf] }
 0x4a9   :  { %v4087_v32 = vrot.slane %v4082_v30, %v7384_v20 }
 0x4ab   :  { %4806 = vmatpush1.bf16.msra.mxu0 %v6994_v33  ;;  %4888 = vmatpush1.bf16.msra.mxu1 %v6997_v34  ;;  %v4095_v33 = vrot.slane %v4082_v30, %v7406_v36  ;;  %v4091_v34 = vrot.slane %v4082_v30, %v7392_v22 }
 0x4ac   :  { %4807 = vmatprep.subr.bf16.mxu0 %v7002_v35  ;;  %4889 = vmatprep.subr.bf16.mxu1 %v7005_v38  ;;  %v4099_v35 = vrot.slane %v4082_v30, %v7395_v23 }
 0x4af   :  { %4808 = vmatpush1.bf16.msra.mxu0 %v7000_v39  ;;  %4890 = vmatpush1.bf16.msra.mxu1 %v7003_v40 }
 0x4b0   :  { %4809 = vmatprep.subr.bf16.mxu0 %v7008_v41  ;;  %4891 = vmatprep.subr.bf16.mxu1 %v7011_v42 }
 0x4b3   :  { %4810 = vmatpush1.bf16.msra.mxu0 %v7006_v43  ;;  %4892 = vmatpush1.bf16.msra.mxu1 %v7009_v44 }
 0x4b4   :  { %4811 = vmatprep.subr.bf16.mxu0 %v7014_v19  ;;  %4893 = vmatprep.subr.bf16.mxu1 %v7017_v45 }
 0x4b7   :  { %4812 = vmatpush1.bf16.msra.mxu0 %v7012_v46  ;;  %4894 = vmatpush1.bf16.msra.mxu1 %v7015_v47 }
 0x4b8   :  { %4813 = vmatprep.subr.bf16.mxu0 %v7020_v49  ;;  %4895 = vmatprep.subr.bf16.mxu1 %v7023_v50 }
 0x4bb   :  { %4814 = vmatpush1.bf16.msra.mxu0 %v7018_v21  ;;  %4896 = vmatpush1.bf16.msra.mxu1 %v7021_v51 }
 0x4bc   :  { %4815 = vmatprep.subr.bf16.mxu0 %v7026_v53  ;;  %4897 = vmatprep.subr.bf16.mxu1 %v7029_v54  ;;  %v5918_v54 = vld [vmem:[%s7475_s10] ss:$0 sm:$0xff] }
 0x4bf   :  { %4816 = vmatpush1.bf16.msra.mxu0 %v7024_v28  ;;  %4898 = vmatpush1.bf16.msra.mxu1 %v7027_v55 }
 0x4c0   :  { %5951 = vmatprep.subr.bf16.mxu0 %v7030_v31  ;;  %5973 = vmatprep.subr.bf16.mxu1 %v7031_v58 }
 0x4c2   :  { %4818 = vmatmul.mubr.bf16.vlgmr.msra.gmra.mrb[12].mxu0 %v3952_v62  ;;  %4900 = vmatmul.mubr.bf16.vlgmr.msra.gmra.mrb[12].mxu1 %v3952_v62 }
 0x4c3   :  { %5952 = vmatpush3.bf16.msra.mxu0 %v7032_v59  ;;  %5974 = vmatpush3.bf16.msra.mxu1 %v7033_v60 }
 0x4c4   :  { %5953 = vmatprep.subr.bf16.mxu0 %v7034_v37  ;;  %5975 = vmatprep.subr.bf16.mxu1 %v7035_v63 }
 0x4c7   :  { %5954 = vmatpush3.bf16.msra.mxu0 %v7036_v0  ;;  %5976 = vmatpush3.bf16.msra.mxu1 %v7037_v1 }
 0x4c8   :  { %5955 = vmatprep.subr.bf16.mxu0 %v7038_v2  ;;  %5977 = vmatprep.subr.bf16.mxu1 %v7039_v3 }
 0x4cb   :  { %5956 = vmatpush3.bf16.msra.mxu0 %v7040_v4  ;;  %5978 = vmatpush3.bf16.msra.mxu1 %v7041_v5 }
 0x4cc   :  { %5957 = vmatprep.subr.bf16.mxu0 %v7042_v6  ;;  %5979 = vmatprep.subr.bf16.mxu1 %v7043_v7 }
 0x4cf   :  { %5958 = vmatpush3.bf16.msra.mxu0 %v7044_v8  ;;  %5980 = vmatpush3.bf16.msra.mxu1 %v7045_v9 }
 0x4d0   :  { %5959 = vmatprep.subr.bf16.mxu0 %v7046_v10  ;;  %5981 = vmatprep.subr.bf16.mxu1 %v7047_v11 }
 0x4d3   :  { %5960 = vmatpush3.bf16.msra.mxu0 %v7048_v12  ;;  %5982 = vmatpush3.bf16.msra.mxu1 %v7049_v13 }
 0x4d4   :  { %5961 = vmatprep.subr.bf16.mxu0 %v7050_v14  ;;  %5983 = vmatprep.subr.bf16.mxu1 %v7051_v15 }
 0x4d7   :  { %5962 = vmatpush3.bf16.msra.mxu0 %v7052_v16  ;;  %5984 = vmatpush3.bf16.msra.mxu1 %v7053_v17 }
 0x4d8   :  { %5963 = vmatprep.subr.bf16.mxu0 %v7054_v18  ;;  %5985 = vmatprep.subr.bf16.mxu1 %v7055_v24 }
 0x4db   :  { %5964 = vmatpush3.bf16.msra.mxu0 %v7056_v56  ;;  %5986 = vmatpush3.bf16.msra.mxu1 %v7057_v25 }
 0x4dc   :  { %5965 = vmatprep.subr.bf16.mxu0 %v7058_v26  ;;  %5987 = vmatprep.subr.bf16.mxu1 %v7059_v27 }
 0x4df   :  { %5966 = vmatpush3.bf16.msra.mxu0 %v7060_v29  ;;  %5988 = vmatpush3.bf16.msra.mxu1 %v7061_v61 }
 0x595   :  { %v4819_v38 = vpop.f32.mrb[12].mxu0  ;;  %v4901_v39 = vpop.f32.mrb[12].mxu1 }
 0x596   :  { %v6007_v40 = vadd.f32 %v4819_v38, %v4087_v32  ;;  %v6009_v41 = vadd.f32 %v4901_v39, %v4095_v33  ;;  %v4821_v42 = vpop.f32.mrb[13].mxu0  ;;  %v4903_v43 = vpop.f32.mrb[13].mxu1 }
 0x597   :  { %v6008_v44 = vadd.f32 %v4821_v42, %v4091_v34  ;;  %v6010_v19 = vadd.f32 %v4903_v43, %v4099_v35  ;;  %v4823_v45 = vpop.f32.mrb[14].mxu0  ;;  %v4905_v46 = vpop.f32.mrb[14].mxu1 }
 0x598   :  { %v4908_v47 = vmax.f32 %v6007_v40, 0.0  ;;  %v4910_v48 = vmax.f32 %v6009_v41, 0.0  ;;  %v4824_v49 = vpop.f32.mrb[15].mxu0  ;;  %v4906_v20 = vpop.f32.mrb[15].mxu1 }
 0x599   :  { %v4909_v50 = vmax.f32 %v6008_v44, 0.0  ;;  %v4911_v36 = vmax.f32 %v6010_v19, 0.0 }
 0x59a   :  { %v4912_v51 = vpack.c.bf16 %v4908_v47, %v4908_v47  ;;  %v4914_v23 = vpack.c.bf16 %v4910_v48, %v4910_v48 }
 0x59b   :  { %v4913_v21 = vpack.c.bf16 %v4909_v50, %v4909_v50  ;;  %v4915_v22 = vpack.c.bf16 %v4911_v36, %v4911_v36 }
 0x59d   :  { %5211 = vmatprep.mubr.bf16.mxu0 %v4913_v21  ;;  %5251 = vmatprep.mubr.bf16.mxu1 %v4915_v22 }
 0x59e   :  { %5212 = vmatmul.mubr.bf16.vlgmr.msra.gmra.mrb[16].mxu0 %v4912_v51  ;;  %5252 = vmatmul.mubr.bf16.vlgmr.msra.gmra.mrb[16].mxu1 %v4914_v23 }
 0x671   :  { %v5967_v52 = vpop.f32.mrb[16].mxu0  ;;  %v5989_v53 = vpop.f32.mrb[16].mxu1 }
 0x672   :  { %v5968_v28 = vpop.f32.mrb[17].mxu0  ;;  %v5990_v55 = vpop.f32.mrb[17].mxu1 }
 0x673   :  { %v5969_v57 = vadd.f32 %v5968_v28, %v5967_v52  ;;  %v5991_v31 = vadd.f32 %v5990_v55, %v5989_v53  ;;  %v5970_v58 = vpop.f32.mrb[18].mxu0  ;;  %v5992_v59 = vpop.f32.mrb[18].mxu1 }
 0x674   :  { %v5971_v60 = vpop.f32.mrb[19].mxu0  ;;  %v5993_v62 = vpop.f32.mrb[19].mxu1 }
 0x675   :  { %v5214_v37 = vadd.f32 %v5969_v57, %v5918_v54 }
 0x677   :  { %v5254_v63 = vadd.f32 %v5991_v31, %v5214_v37 }
 0x679   :  { %5259 = vst [vmem:[#allocation13] sm:$0xff] %v5254_v63 }
 0x67a   :  { %7205 = shalt.err (!%p7202_p10)
}
 0x67b   :  { %s7206_s20 = scalar_lea.hbm %s7476_s11, 128 }
 0x67c   :  { %p7207_p11 = scmp.ne.s32.totalorder %s7476_s11, %s7206_s20  ;;  %p7210_p12 = scmp.lt.u32.totalorder %s7206_s20, %s7476_s11 }
 0x67e   :  { %p7212_p13 = pnand %p7210_p12, %p7207_p11 }
 0x680   :  { %7215 = shalt.err (!%p7212_p13)
}
 0x681   :  { %5269 = dma.vmem_to_hbm [thread:$0]  %s5267_s19, 128, %s7476_s11, [#allocation4]  }
 0x682   :  { %7224 = dma.done.wait [#allocation4], 128  }
 0x683   :  { %7225 = vsyncadd [#allocation4], 4294967168 }
 0x684   :  { %5273 = vsyncpa [#allocation3], 1 }
 0x685   :  { %5274 = vsyncpa [#allocation6], 1 }
 0x686   :  { %5275 = vsyncpa [#allocation9], 1 }
 0x687   :  { %5276 = vsyncpa [#allocation12], 1 }
 0x688   :  { %5277 = vsyncpa [#allocation4], 1 }

</bundles_post_ra>
